<compile_context>
chip_gen: v7x
topology: tpu7x:2x2x1
jax: 0.10.0
libtpu: 0.0.40
codegen_flags: <defaults>
</compile_context>

<pallas_src>
import functools

import jax
import jax.numpy as jnp
from jax import lax
from jax.experimental import pallas as pl
from jax.experimental.pallas import tpu as pltpu

LANE = 128                       # lane-dense channel padding for outputs
VMEM_LIMIT = 48 * 1024 * 1024    # safe on v5e/v6e (128 MiB) and v7x (64 MiB)


def _rup(x, m):
    return ((x + m - 1) // m) * m


def _choose_tm(m):
    """Row tile: >=4 grid steps when possible, <=512 rows per step."""
    return max(8, min(512, _rup(max(m // 4, 1), 8)))


# ----------------------------------------------------------------------------
# Pallas kernels
# ----------------------------------------------------------------------------
def _mm_bn_act_kernel(x_ref, w_ref, s_ref, b_ref, o_ref, *, relu):
    """o = maybe_relu((x @ w) * scale + bias); bf16 MXU operands, f32 acc."""
    y = jnp.dot(x_ref[...], w_ref[...], preferred_element_type=jnp.float32)
    y = y * s_ref[...] + b_ref[...]
    if relu:
        y = jnp.maximum(y, 0.0)
    o_ref[...] = y.astype(o_ref.dtype)


def _mm_bn_add_relu_kernel(x_ref, w_ref, s_ref, b_ref, id_ref, sel_ref, o_ref):
    """conv3 matmul + folded BN + residual + final ReLU, fully fused.

    The identity arrives unpadded as a (tm, n_in) bf16 block; its channel
    zero-padding / lane placement is performed by an exact 0/1 selection
    matmul (id @ sel), so no HBM-padded identity slab is ever materialized.
    NOTE: padded tail rows (beyond the true m) evaluate to relu(bias) != 0;
    they are sliced off by the wrapper and must never be kept."""
    y = jnp.dot(x_ref[...], w_ref[...], preferred_element_type=jnp.float32)
    y = y * s_ref[...] + b_ref[...]
    y = y + jnp.dot(id_ref[...], sel_ref[...],
                    preferred_element_type=jnp.float32)
    o_ref[...] = jnp.maximum(y, 0.0).astype(o_ref.dtype)


def _conv3x3_bn_relu_kernel(x_ref, w_ref, s_ref, b_ref, o_ref, xpad_ref, *,
                            stride, dilation):
    """3x3 conv for one batch element: 9 tap-matmuls chained into one local
    f32 accumulator (single store), spatial halo built in VMEM.

    x_ref:    (1, H, W, Cin_p)  unpadded bf16 input (auto-DMA'd to VMEM).
    w_ref:    (9, Cin_p, Cout_p) bf16 taps.
    xpad_ref: (H+2p, W+2p, Cin_p) f32 VMEM scratch holding the halo-padded
              activation (f32 so the offset interior store stays on the
              simple unpacked-sublane path; values are exact bf16 numbers).
    """
    _, h, w, cip = x_ref.shape
    _, ho, wo, cop = o_ref.shape
    pad = dilation

    # Build the spatially padded slab entirely in VMEM (no HBM pad pass).
    xpad_ref[...] = jnp.zeros_like(xpad_ref)
    xpad_ref[pad:pad + h, pad:pad + w, :] = x_ref[0].astype(xpad_ref.dtype)
    xp = xpad_ref[...].astype(jnp.bfloat16)          # one cast pass

    acc = None
    for ky in range(3):
        for kx in range(3):
            ys, xs = ky * dilation, kx * dilation
            if stride == 1:
                patch = xp[ys:ys + ho, xs:xs + wo, :]
            else:
                # TODO(synk): stride>1 path is functional but unoptimized
                # (doubly-strided slice); unused when downsample is None.
                patch = lax.slice(
                    xp, (ys, xs, 0),
                    (ys + (ho - 1) * stride + 1, xs + (wo - 1) * stride + 1,
                     cip),
                    (stride, stride, 1))
            t = jnp.dot(patch.reshape(ho * wo, cip), w_ref[ky * 3 + kx],
                        preferred_element_type=jnp.float32)
            acc = t if acc is None else acc + t      # chained, MRB-friendly
    y = jnp.maximum(acc * s_ref[...] + b_ref[...], 0.0)
    o_ref[0] = y.reshape(ho, wo, cop).astype(o_ref.dtype)


# ----------------------------------------------------------------------------
# Pallas wrappers
# ----------------------------------------------------------------------------
def _pad_rows(x2d, tm):
    m = x2d.shape[0]
    mp = _rup(m, tm)
    if mp != m:
        x2d = jnp.pad(x2d, ((0, mp - m), (0, 0)))
    return x2d, m, mp


def matmul_bn_act(x2d, w, scale, bias, *, relu, out_dtype):
    m, k = x2d.shape
    cout = w.shape[1]
    tm = _choose_tm(m)
    xp, m, mp = _pad_rows(x2d, tm)
    out = pl.pallas_call(
        functools.partial(_mm_bn_act_kernel, relu=relu),
        out_shape=jax.ShapeDtypeStruct((mp, cout), out_dtype),
        grid_spec=pltpu.PrefetchScalarGridSpec(
            num_scalar_prefetch=0,
            grid=(mp // tm,),
            in_specs=[
                pl.BlockSpec((tm, k), lambda i: (i, 0)),
                pl.BlockSpec((k, cout), lambda i: (0, 0)),
                pl.BlockSpec((1, cout), lambda i: (0, 0)),
                pl.BlockSpec((1, cout), lambda i: (0, 0)),
            ],
            out_specs=pl.BlockSpec((tm, cout), lambda i: (i, 0)),
        ),
        compiler_params=pltpu.CompilerParams(
            dimension_semantics=("parallel",),
            vmem_limit_bytes=VMEM_LIMIT),
    )(xp, w, scale, bias)
    return out[:m] if mp != m else out


def matmul_bn_add_relu(x2d, w, scale, bias, identity2d, sel):
    m, k = x2d.shape
    cout = w.shape[1]
    n_in = identity2d.shape[1]
    tm = _choose_tm(m)
    xp, m, mp = _pad_rows(x2d, tm)
    idp, _, _ = _pad_rows(identity2d, tm)   # same tm -> same mp (stride == 1)
    out = pl.pallas_call(
        _mm_bn_add_relu_kernel,
        out_shape=jax.ShapeDtypeStruct((mp, cout), jnp.float32),
        grid_spec=pltpu.PrefetchScalarGridSpec(
            num_scalar_prefetch=0,
            grid=(mp // tm,),
            in_specs=[
                pl.BlockSpec((tm, k), lambda i: (i, 0)),
                pl.BlockSpec((k, cout), lambda i: (0, 0)),
                pl.BlockSpec((1, cout), lambda i: (0, 0)),
                pl.BlockSpec((1, cout), lambda i: (0, 0)),
                pl.BlockSpec((tm, n_in), lambda i: (i, 0)),
                pl.BlockSpec((n_in, cout), lambda i: (0, 0)),
            ],
            out_specs=pl.BlockSpec((tm, cout), lambda i: (i, 0)),
        ),
        compiler_params=pltpu.CompilerParams(
            dimension_semantics=("parallel",),
            vmem_limit_bytes=VMEM_LIMIT),
    )(xp, w, scale, bias, idp, sel)
    return out[:m] if mp != m else out


def conv3x3_bn_relu(x_nhwc, w9, scale, bias, *, stride, dilation, ho, wo,
                    out_dtype):
    n, h, w, cip = x_nhwc.shape
    cop = w9.shape[2]
    hp = h + 2 * dilation
    wp = w + 2 * dilation
    return pl.pallas_call(
        functools.partial(_conv3x3_bn_relu_kernel, stride=stride,
                          dilation=dilation),
        out_shape=jax.ShapeDtypeStruct((n, ho, wo, cop), out_dtype),
        grid_spec=pltpu.PrefetchScalarGridSpec(
            num_scalar_prefetch=0,
            grid=(n,),
            in_specs=[
                pl.BlockSpec((1, h, w, cip), lambda i: (i, 0, 0, 0)),
                pl.BlockSpec((9, cip, cop), lambda i: (0, 0, 0)),
                pl.BlockSpec((1, cop), lambda i: (0, 0)),
                pl.BlockSpec((1, cop), lambda i: (0, 0)),
            ],
            out_specs=pl.BlockSpec((1, ho, wo, cop), lambda i: (i, 0, 0, 0)),
            scratch_shapes=[pltpu.VMEM((hp, wp, cip), jnp.float32)],
        ),
        compiler_params=pltpu.CompilerParams(
            dimension_semantics=("parallel",),
            vmem_limit_bytes=VMEM_LIMIT),
    )(x_nhwc, w9, scale, bias)


# ----------------------------------------------------------------------------
# One-time parameter preparation (hoisted out of the hot path)
# ----------------------------------------------------------------------------
def fold_bn(gamma, beta, mean, var, eps=1e-5):
    scale = gamma / jnp.sqrt(var + eps)
    bias = beta - mean * scale
    return scale, bias


def prepare_params(params, lane=LANE):
    """Fold BN, transpose weights to (K, Cout), lane-pad only the outputs,
    bake the residual channel placement into a 0/1 selection matrix."""
    w1, w2, w3 = params["w1"], params["w2"], params["w3"]
    c1, n_in = w1.shape[0], w1.shape[1]
    c2 = w2.shape[0]
    c3 = w3.shape[0]

    c1p = _rup(c1, lane)
    c2p = _rup(c2, lane)
    c_fin = max(c3, n_in)
    cfin_p = _rup(c_fin, lane)
    if c3 >= n_in:
        off_out, off_id = 0, (c3 - n_in) // 2
    else:
        off_out, off_id = (n_in - c3) // 2, 0

    bf16 = jnp.bfloat16
    # conv1: (c1, n_in, 1, 1) -> (n_in, c1p).  K stays the TRUE n_in so the
    # activation is read from HBM unpadded; only Cout is lane-padded.
    w1m = jnp.transpose(w1.reshape(c1, n_in), (1, 0))
    w1m = jnp.pad(w1m, ((0, 0), (0, c1p - c1))).astype(bf16)
    # conv2: (c2, c1, 3, 3) -> (9, c1p, c2p) (input is conv1's 128-lane out).
    w2m = jnp.transpose(w2, (2, 3, 1, 0)).reshape(9, c1, c2)
    w2m = jnp.pad(w2m, ((0, 0), (0, c1p - c1), (0, c2p - c2))).astype(bf16)
    # conv3: (c3, c2, 1, 1) -> (c2p, cfin_p) placed at lane offset off_out.
    w3m = jnp.transpose(w3.reshape(c3, c2), (1, 0))
    w3m = jnp.pad(w3m, ((0, c2p - c2),
                        (off_out, cfin_p - c3 - off_out))).astype(bf16)
    # Identity placement: exact 0/1 selection matrix (id @ sel is exact in
    # f32 accumulation, so this is numerically a pure lane shift).
    sel = jnp.zeros((n_in, cfin_p), jnp.float32)
    sel = sel.at[jnp.arange(n_in), off_id + jnp.arange(n_in)].set(1.0)
    sel = sel.astype(bf16)

    s1, b1 = fold_bn(*params["bn1"])
    s2, b2 = fold_bn(*params["bn2"])
    s3, b3 = fold_bn(*params["bn3"])

    def padvec(v, off, total):
        v = v.astype(jnp.float32)
        return jnp.pad(v, (off, total - v.shape[0] - off)).reshape(1, total)

    prep = dict(
        w1=w1m, w2=w2m, w3=w3m, sel=sel,
        s1=padvec(s1, 0, c1p), b1=padvec(b1, 0, c1p),
        s2=padvec(s2, 0, c2p), b2=padvec(b2, 0, c2p),
        s3=padvec(s3, off_out, cfin_p), b3=padvec(b3, off_out, cfin_p),
    )
    meta = dict(n_in=n_in, c_fin=c_fin, c1p=c1p, c2p=c2p, cfin_p=cfin_p)
    return prep, meta


# ----------------------------------------------------------------------------
# Bottleneck forward (downsample=None, groups=1)
# ----------------------------------------------------------------------------
def bottleneck_forward(x_nchw, prep, *, meta, stride=1, dilation=1):
    """Bottleneck forward.  Input/output are NCHW float32."""
    # downsample=None: the residual add requires matching spatial dims.
    assert stride == 1, "downsample=None requires stride == 1"
    bf16 = jnp.bfloat16
    n_in = meta["n_in"]
    x = jnp.transpose(x_nchw, (0, 2, 3, 1)).astype(bf16)       # NHWC bf16
    n, h, w, _ = x.shape

    # conv1 (1x1) + BN + ReLU -- input channels stay at n_in (no HBM pad).
    h1 = matmul_bn_act(x.reshape(n * h * w, n_in),
                       prep["w1"], prep["s1"], prep["b1"],
                       relu=True, out_dtype=bf16)
    h1 = h1.reshape(n, h, w, meta["c1p"])

    # conv2 (3x3, padding=dilation) + BN + ReLU; halo built in VMEM in-kernel.
    ho = (h - 1) // stride + 1
    wo = (w - 1) // stride + 1
    h2 = conv3x3_bn_relu(h1, prep["w2"], prep["s2"], prep["b2"],
                         stride=stride, dilation=dilation, ho=ho, wo=wo,
                         out_dtype=bf16)

    # conv3 (1x1) + BN + residual (zero-padded channels) + ReLU, fused.
    ident = x.reshape(n * h * w, n_in)              # bf16, unpadded
    y = matmul_bn_add_relu(h2.reshape(n * ho * wo, meta["c2p"]),
                           prep["w3"], prep["s3"], prep["b3"],
                           ident, prep["sel"])
    y = y.reshape(n, ho, wo, meta["cfin_p"])[..., :meta["c_fin"]]
    return jnp.transpose(y, (0, 3, 1, 2)).astype(x_nchw.dtype)  # -> NCHW


# ----------------------------------------------------------------------------
# Pure-JAX reference (bf16-rounded operands, f32 accumulation, like the MXU)
# ----------------------------------------------------------------------------
def _ref_conv(x_nhwc, w_oihw, stride, dilation, padding):
    w_hwio = jnp.transpose(w_oihw, (2, 3, 1, 0))
    return lax.conv_general_dilated(
        x_nhwc, w_hwio,
        window_strides=(stride, stride),
        padding=[(padding, padding), (padding, padding)],
        rhs_dilation=(dilation, dilation),
        dimension_numbers=("NHWC", "HWIO", "NHWC"),
        precision=lax.Precision.HIGHEST,
    )


def zero_padding_nhwc(x1, x2):
    c1, c2 = x1.shape[-1], x2.shape[-1]
    if c1 == c2:
        return x1, x2
    diff = abs(c1 - c2)
    lo, hi = diff // 2, diff - diff // 2
    pad = ((0, 0), (0, 0), (0, 0), (lo, hi))
    if c1 < c2:
        x1 = jnp.pad(x1, pad)
    else:
        x2 = jnp.pad(x2, pad)
    return x1, x2


def bottleneck_reference(x_nchw, params, stride=1, dilation=1):
    q = lambda a: a.astype(jnp.bfloat16).astype(jnp.float32)
    x = jnp.transpose(x_nchw, (0, 2, 3, 1)).astype(jnp.float32)
    s1, b1 = fold_bn(*params["bn1"])
    s2, b2 = fold_bn(*params["bn2"])
    s3, b3 = fold_bn(*params["bn3"])
    h = jnp.maximum(_ref_conv(q(x), q(params["w1"]), 1, 1, 0) * s1 + b1, 0.0)
    h = jnp.maximum(
        _ref_conv(q(h), q(params["w2"]), stride, dilation, dilation) * s2 + b2,
        0.0)
    h = _ref_conv(q(h), q(params["w3"]), 1, 1, 0) * s3 + b3
    out, ident = zero_padding_nhwc(h, q(x))
    y = jnp.maximum(out + ident, 0.0)
    return jnp.transpose(y, (0, 3, 1, 2))


# ----------------------------------------------------------------------------
# Main
# ----------------------------------------------------------------------------
if __name__ == "__main__":
    key = jax.random.PRNGKey(0)
    ks = jax.random.split(key, 16)

    # Small, module-consistent shapes.
    N, H, W = 2, 16, 16
    n_in, c1, c2, c3 = 16, 8, 8, 32     # conv1: 16->8, conv2: 8->8, conv3: 8->32
    stride, dilation = 1, 1

    def bn_params(kg, kb, km, kv, c):
        gamma = 0.5 + jax.random.uniform(kg, (c,), jnp.float32)
        beta = 0.1 * jax.random.normal(kb, (c,), jnp.float32)
        mean = 0.1 * jax.random.normal(km, (c,), jnp.float32)
        var = 0.5 + jax.random.uniform(kv, (c,), jnp.float32)
        return gamma, beta, mean, var

    params = {
        "w1": 0.2 * jax.random.normal(ks[0], (c1, n_in, 1, 1), jnp.float32),
        "w2": 0.2 * jax.random.normal(ks[1], (c2, c1, 3, 3), jnp.float32),
        "w3": 0.2 * jax.random.normal(ks[2], (c3, c2, 1, 1), jnp.float32),
        "bn1": bn_params(ks[3], ks[4], ks[5], ks[6], c1),
        "bn2": bn_params(ks[7], ks[8], ks[9], ks[10], c2),
        "bn3": bn_params(ks[11], ks[12], ks[13], ks[14], c3),
    }
    x = jax.random.normal(ks[15], (N, n_in, H, W), jnp.float32)

    # Weight layout / BN folding / lane padding is done once, outside jit.
    prep, meta = prepare_params(params)
    fwd = jax.jit(functools.partial(bottleneck_forward, meta=meta,
                                    stride=stride, dilation=dilation))

    out = jax.block_until_ready(fwd(x, prep))
    ref = jax.block_until_ready(
        bottleneck_reference(x, params, stride=stride, dilation=dilation))

    assert out.shape == (N, c3, H, W), out.shape
    max_err = float(jnp.max(jnp.abs(out - ref)))
    # bf16 MXU operands vs bf16-rounded f32 reference: differences come only
    # from accumulation order and rare 1-ulp bf16 rounding flips.
    assert jnp.allclose(out, ref, rtol=2e-2, atol=2e-2), max_err
    print("KERNEL_OK")
</pallas_src>

<mosaic_0001>
module attributes {stable_mosaic.version = 11 : i64} {
  func.func @_conv3x3_bn_relu_kernel(%arg0: i32, %arg1: memref<1x16x16x128xbf16, #tpu.memory_space<vmem>>, %arg2: memref<9x128x128xbf16, #tpu.memory_space<vmem>>, %arg3: memref<1x128xf32, #tpu.memory_space<vmem>>, %arg4: memref<1x128xf32, #tpu.memory_space<vmem>>, %arg5: memref<1x16x16x128xbf16, #tpu.memory_space<vmem>>, %arg6: memref<18x18x128xf32, #tpu.memory_space<vmem>>) attributes {dimension_semantics = [#tpu.dimension_semantics<parallel>], iteration_bounds = array<i64: 2>, scalar_prefetch = 0 : i64, scratch_operands = 1 : i64, tpu.core_type = #tpu.core_type<tc>, window_params = [{transform_indices = @transform_0, window_bounds = array<i64: 1, 16, 16, 128>}, {pipeline_mode = #tpu.pipeline_mode<synchronous>, transform_indices = @transform_1, window_bounds = array<i64: 9, 128, 128>}, {pipeline_mode = #tpu.pipeline_mode<synchronous>, transform_indices = @transform_2, window_bounds = array<i64: 1, 128>}, {pipeline_mode = #tpu.pipeline_mode<synchronous>, transform_indices = @transform_3, window_bounds = array<i64: 1, 128>}, {transform_indices = @transform_4, window_bounds = array<i64: 1, 16, 16, 128>}]} {
    %cst = arith.constant 0.000000e+00 : f32
    %0 = vector.broadcast %cst : f32 to vector<18x18x128xf32>
    %c0 = arith.constant 0 : index
    %c0_0 = arith.constant 0 : index
    %c0_1 = arith.constant 0 : index
    %1 = vector.load %arg6[%c0, %c0_0, %c0_1] : memref<18x18x128xf32, #tpu.memory_space<vmem>>, vector<18x18x128xf32>
    tpu.vector_store %arg6[%c0, %c0_0, %c0_1], %0 {strides = array<i32>} : memref<18x18x128xf32, #tpu.memory_space<vmem>>, vector<18x18x128xf32>,
    %c0_2 = arith.constant 0 : index
    %c0_3 = arith.constant 0 : index
    %c0_4 = arith.constant 0 : index
    %c0_5 = arith.constant 0 : index
    %2 = vector.load %arg1[%c0_2, %c0_3, %c0_4, %c0_5] : memref<1x16x16x128xbf16, #tpu.memory_space<vmem>>, vector<1x16x16x128xbf16>
    %3 = vector.shape_cast %2 : vector<1x16x16x128xbf16> to vector<16x16x128xbf16>
    %4 = arith.extf %3 : vector<16x16x128xbf16> to vector<16x16x128xf32>
    %c1 = arith.constant 1 : index
    %c1_6 = arith.constant 1 : index
    %c0_7 = arith.constant 0 : index
    %5 = vector.load %arg6[%c1, %c1_6, %c0_7] : memref<18x18x128xf32, #tpu.memory_space<vmem>>, vector<16x16x128xf32>
    tpu.vector_store %arg6[%c1, %c1_6, %c0_7], %4 {strides = array<i32>} : memref<18x18x128xf32, #tpu.memory_space<vmem>>, vector<16x16x128xf32>,
    %c0_8 = arith.constant 0 : index
    %c0_9 = arith.constant 0 : index
    %c0_10 = arith.constant 0 : index
    %6 = vector.load %arg6[%c0_8, %c0_9, %c0_10] : memref<18x18x128xf32, #tpu.memory_space<vmem>>, vector<18x18x128xf32>
    %7 = arith.truncf %6 : vector<18x18x128xf32> to vector<18x18x128xbf16>
    %8 = vector.extract_strided_slice %7 {offsets = [0, 0, 0], sizes = [16, 16, 128], strides = [1, 1, 1]} : vector<18x18x128xbf16> to vector<16x16x128xbf16>
    %9 = vector.shape_cast %8 : vector<16x16x128xbf16> to vector<256x128xbf16>
    %c0_11 = arith.constant 0 : index
    %c0_12 = arith.constant 0 : index
    %c0_13 = arith.constant 0 : index
    %10 = vector.load %arg2[%c0_11, %c0_12, %c0_13] : memref<9x128x128xbf16, #tpu.memory_space<vmem>>, vector<1x128x128xbf16>
    %11 = vector.shape_cast %10 : vector<1x128x128xbf16> to vector<128x128xbf16>
    %cst_14 = arith.constant dense<0.000000e+00> : vector<256x128xf32>
    %12 = tpu.matmul %9, %11, %cst_14 {dimension_numbers = #tpu.dot_dimension_numbers<[1], [0], [0], [1], [0, 0, 1, 1], [], []>} : vector<256x128xbf16>, vector<128x128xbf16>, vector<256x128xf32> -> vector<256x128xf32>
    %13 = vector.extract_strided_slice %7 {offsets = [0, 1, 0], sizes = [16, 16, 128], strides = [1, 1, 1]} : vector<18x18x128xbf16> to vector<16x16x128xbf16>
    %14 = vector.shape_cast %13 : vector<16x16x128xbf16> to vector<256x128xbf16>
    %c1_15 = arith.constant 1 : index
    %c0_16 = arith.constant 0 : index
    %c0_17 = arith.constant 0 : index
    %15 = vector.load %arg2[%c1_15, %c0_16, %c0_17] : memref<9x128x128xbf16, #tpu.memory_space<vmem>>, vector<1x128x128xbf16>
    %16 = vector.shape_cast %15 : vector<1x128x128xbf16> to vector<128x128xbf16>
    %cst_18 = arith.constant dense<0.000000e+00> : vector<256x128xf32>
    %17 = tpu.matmul %14, %16, %cst_18 {dimension_numbers = #tpu.dot_dimension_numbers<[1], [0], [0], [1], [0, 0, 1, 1], [], []>} : vector<256x128xbf16>, vector<128x128xbf16>, vector<256x128xf32> -> vector<256x128xf32>
    %18 = arith.addf %12, %17 : vector<256x128xf32>
    %19 = vector.extract_strided_slice %7 {offsets = [0, 2, 0], sizes = [16, 16, 128], strides = [1, 1, 1]} : vector<18x18x128xbf16> to vector<16x16x128xbf16>
    %20 = vector.shape_cast %19 : vector<16x16x128xbf16> to vector<256x128xbf16>
    %c2 = arith.constant 2 : index
    %c0_19 = arith.constant 0 : index
    %c0_20 = arith.constant 0 : index
    %21 = vector.load %arg2[%c2, %c0_19, %c0_20] : memref<9x128x128xbf16, #tpu.memory_space<vmem>>, vector<1x128x128xbf16>
    %22 = vector.shape_cast %21 : vector<1x128x128xbf16> to vector<128x128xbf16>
    %cst_21 = arith.constant dense<0.000000e+00> : vector<256x128xf32>
    %23 = tpu.matmul %20, %22, %cst_21 {dimension_numbers = #tpu.dot_dimension_numbers<[1], [0], [0], [1], [0, 0, 1, 1], [], []>} : vector<256x128xbf16>, vector<128x128xbf16>, vector<256x128xf32> -> vector<256x128xf32>
    %24 = arith.addf %18, %23 : vector<256x128xf32>
    %25 = vector.extract_strided_slice %7 {offsets = [1, 0, 0], sizes = [16, 16, 128], strides = [1, 1, 1]} : vector<18x18x128xbf16> to vector<16x16x128xbf16>
    %26 = vector.shape_cast %25 : vector<16x16x128xbf16> to vector<256x128xbf16>
    %c3 = arith.constant 3 : index
    %c0_22 = arith.constant 0 : index
    %c0_23 = arith.constant 0 : index
    %27 = vector.load %arg2[%c3, %c0_22, %c0_23] : memref<9x128x128xbf16, #tpu.memory_space<vmem>>, vector<1x128x128xbf16>
    %28 = vector.shape_cast %27 : vector<1x128x128xbf16> to vector<128x128xbf16>
    %cst_24 = arith.constant dense<0.000000e+00> : vector<256x128xf32>
    %29 = tpu.matmul %26, %28, %cst_24 {dimension_numbers = #tpu.dot_dimension_numbers<[1], [0], [0], [1], [0, 0, 1, 1], [], []>} : vector<256x128xbf16>, vector<128x128xbf16>, vector<256x128xf32> -> vector<256x128xf32>
    %30 = arith.addf %24, %29 : vector<256x128xf32>
    %31 = vector.extract_strided_slice %7 {offsets = [1, 1, 0], sizes = [16, 16, 128], strides = [1, 1, 1]} : vector<18x18x128xbf16> to vector<16x16x128xbf16>
    %32 = vector.shape_cast %31 : vector<16x16x128xbf16> to vector<256x128xbf16>
    %c4 = arith.constant 4 : index
    %c0_25 = arith.constant 0 : index
    %c0_26 = arith.constant 0 : index
    %33 = vector.load %arg2[%c4, %c0_25, %c0_26] : memref<9x128x128xbf16, #tpu.memory_space<vmem>>, vector<1x128x128xbf16>
    %34 = vector.shape_cast %33 : vector<1x128x128xbf16> to vector<128x128xbf16>
    %cst_27 = arith.constant dense<0.000000e+00> : vector<256x128xf32>
    %35 = tpu.matmul %32, %34, %cst_27 {dimension_numbers = #tpu.dot_dimension_numbers<[1], [0], [0], [1], [0, 0, 1, 1], [], []>} : vector<256x128xbf16>, vector<128x128xbf16>, vector<256x128xf32> -> vector<256x128xf32>
    %36 = arith.addf %30, %35 : vector<256x128xf32>
    %37 = vector.extract_strided_slice %7 {offsets = [1, 2, 0], sizes = [16, 16, 128], strides = [1, 1, 1]} : vector<18x18x128xbf16> to vector<16x16x128xbf16>
    %38 = vector.shape_cast %37 : vector<16x16x128xbf16> to vector<256x128xbf16>
    %c5 = arith.constant 5 : index
    %c0_28 = arith.constant 0 : index
    %c0_29 = arith.constant 0 : index
    %39 = vector.load %arg2[%c5, %c0_28, %c0_29] : memref<9x128x128xbf16, #tpu.memory_space<vmem>>, vector<1x128x128xbf16>
    %40 = vector.shape_cast %39 : vector<1x128x128xbf16> to vector<128x128xbf16>
    %cst_30 = arith.constant dense<0.000000e+00> : vector<256x128xf32>
    %41 = tpu.matmul %38, %40, %cst_30 {dimension_numbers = #tpu.dot_dimension_numbers<[1], [0], [0], [1], [0, 0, 1, 1], [], []>} : vector<256x128xbf16>, vector<128x128xbf16>, vector<256x128xf32> -> vector<256x128xf32>
    %42 = arith.addf %36, %41 : vector<256x128xf32>
    %43 = vector.extract_strided_slice %7 {offsets = [2, 0, 0], sizes = [16, 16, 128], strides = [1, 1, 1]} : vector<18x18x128xbf16> to vector<16x16x128xbf16>
    %44 = vector.shape_cast %43 : vector<16x16x128xbf16> to vector<256x128xbf16>
    %c6 = arith.constant 6 : index
    %c0_31 = arith.constant 0 : index
    %c0_32 = arith.constant 0 : index
    %45 = vector.load %arg2[%c6, %c0_31, %c0_32] : memref<9x128x128xbf16, #tpu.memory_space<vmem>>, vector<1x128x128xbf16>
    %46 = vector.shape_cast %45 : vector<1x128x128xbf16> to vector<128x128xbf16>
    %cst_33 = arith.constant dense<0.000000e+00> : vector<256x128xf32>
    %47 = tpu.matmul %44, %46, %cst_33 {dimension_numbers = #tpu.dot_dimension_numbers<[1], [0], [0], [1], [0, 0, 1, 1], [], []>} : vector<256x128xbf16>, vector<128x128xbf16>, vector<256x128xf32> -> vector<256x128xf32>
    %48 = arith.addf %42, %47 : vector<256x128xf32>
    %49 = vector.extract_strided_slice %7 {offsets = [2, 1, 0], sizes = [16, 16, 128], strides = [1, 1, 1]} : vector<18x18x128xbf16> to vector<16x16x128xbf16>
    %50 = vector.shape_cast %49 : vector<16x16x128xbf16> to vector<256x128xbf16>
    %c7 = arith.constant 7 : index
    %c0_34 = arith.constant 0 : index
    %c0_35 = arith.constant 0 : index
    %51 = vector.load %arg2[%c7, %c0_34, %c0_35] : memref<9x128x128xbf16, #tpu.memory_space<vmem>>, vector<1x128x128xbf16>
    %52 = vector.shape_cast %51 : vector<1x128x128xbf16> to vector<128x128xbf16>
    %cst_36 = arith.constant dense<0.000000e+00> : vector<256x128xf32>
    %53 = tpu.matmul %50, %52, %cst_36 {dimension_numbers = #tpu.dot_dimension_numbers<[1], [0], [0], [1], [0, 0, 1, 1], [], []>} : vector<256x128xbf16>, vector<128x128xbf16>, vector<256x128xf32> -> vector<256x128xf32>
    %54 = arith.addf %48, %53 : vector<256x128xf32>
    %55 = vector.extract_strided_slice %7 {offsets = [2, 2, 0], sizes = [16, 16, 128], strides = [1, 1, 1]} : vector<18x18x128xbf16> to vector<16x16x128xbf16>
    %56 = vector.shape_cast %55 : vector<16x16x128xbf16> to vector<256x128xbf16>
    %c8 = arith.constant 8 : index
    %c0_37 = arith.constant 0 : index
    %c0_38 = arith.constant 0 : index
    %57 = vector.load %arg2[%c8, %c0_37, %c0_38] : memref<9x128x128xbf16, #tpu.memory_space<vmem>>, vector<1x128x128xbf16>
    %58 = vector.shape_cast %57 : vector<1x128x128xbf16> to vector<128x128xbf16>
    %cst_39 = arith.constant dense<0.000000e+00> : vector<256x128xf32>
    %59 = tpu.matmul %56, %58, %cst_39 {dimension_numbers = #tpu.dot_dimension_numbers<[1], [0], [0], [1], [0, 0, 1, 1], [], []>} : vector<256x128xbf16>, vector<128x128xbf16>, vector<256x128xf32> -> vector<256x128xf32>
    %60 = arith.addf %54, %59 : vector<256x128xf32>
    %c0_40 = arith.constant 0 : index
    %c0_41 = arith.constant 0 : index
    %61 = vector.load %arg3[%c0_40, %c0_41] : memref<1x128xf32, #tpu.memory_space<vmem>>, vector<1x128xf32>
    %62 = vector.broadcast %61 : vector<1x128xf32> to vector<256x128xf32>
    %63 = arith.mulf %60, %62 : vector<256x128xf32>
    %c0_42 = arith.constant 0 : index
    %c0_43 = arith.constant 0 : index
    %64 = vector.load %arg4[%c0_42, %c0_43] : memref<1x128xf32, #tpu.memory_space<vmem>>, vector<1x128xf32>
    %65 = vector.broadcast %64 : vector<1x128xf32> to vector<256x128xf32>
    %66 = arith.addf %63, %65 : vector<256x128xf32>
    %cst_44 = arith.constant 0.000000e+00 : f32
    %67 = vector.broadcast %cst_44 : f32 to vector<256x128xf32>
    %68 = arith.maximumf %66, %67 : vector<256x128xf32>
    %69 = vector.shape_cast %68 : vector<256x128xf32> to vector<16x16x128xf32>
    %70 = arith.truncf %69 : vector<16x16x128xf32> to vector<16x16x128xbf16>
    %c0_45 = arith.constant 0 : index
    %c0_46 = arith.constant 0 : index
    %c0_47 = arith.constant 0 : index
    %c0_48 = arith.constant 0 : index
    %71 = vector.load %arg5[%c0_45, %c0_46, %c0_47, %c0_48] : memref<1x16x16x128xbf16, #tpu.memory_space<vmem>>, vector<1x16x16x128xbf16>
    %72 = vector.shape_cast %71 : vector<1x16x16x128xbf16> to vector<16x16x128xbf16>
    %73 = vector.shape_cast %70 : vector<16x16x128xbf16> to vector<1x16x16x128xbf16>
    tpu.vector_store %arg5[%c0_45, %c0_46, %c0_47, %c0_48], %73 {strides = array<i32>} : memref<1x16x16x128xbf16, #tpu.memory_space<vmem>>, vector<1x16x16x128xbf16>,
    return
  }
  func.func @transform_0(%arg0: i32) -> (i32, i32, i32, i32) {
    %c0_i32 = arith.constant 0 : i32
    %c0_i32_0 = arith.constant 0 : i32
    %c0_i32_1 = arith.constant 0 : i32
    %c0_i32_2 = arith.constant 0 : i32
    return %arg0, %c0_i32, %c0_i32_0, %c0_i32_1 : i32, i32, i32, i32
  }
  func.func @transform_1(%arg0: i32) -> (i32, i32, i32) {
    %c0_i32 = arith.constant 0 : i32
    %c0_i32_0 = arith.constant 0 : i32
    %c0_i32_1 = arith.constant 0 : i32
    %c0_i32_2 = arith.constant 0 : i32
    return %c0_i32, %c0_i32_0, %c0_i32_1 : i32, i32, i32
  }
  func.func @transform_2(%arg0: i32) -> (i32, i32) {
    %c0_i32 = arith.constant 0 : i32
    %c0_i32_0 = arith.constant 0 : i32
    %c0_i32_1 = arith.constant 0 : i32
    return %c0_i32, %c0_i32_0 : i32, i32
  }
  func.func @transform_3(%arg0: i32) -> (i32, i32) {
    %c0_i32 = arith.constant 0 : i32
    %c0_i32_0 = arith.constant 0 : i32
    %c0_i32_1 = arith.constant 0 : i32
    return %c0_i32, %c0_i32_0 : i32, i32
  }
  func.func @transform_4(%arg0: i32) -> (i32, i32, i32, i32) {
    %c0_i32 = arith.constant 0 : i32
    %c0_i32_0 = arith.constant 0 : i32
    %c0_i32_1 = arith.constant 0 : i32
    %c0_i32_2 = arith.constant 0 : i32
    return %arg0, %c0_i32, %c0_i32_0, %c0_i32_1 : i32, i32, i32, i32
  }
}

module attributes {stable_mosaic.version = 11 : i64} {
  func.func @_mm_bn_act_kernel(%arg0: i32, %arg1: memref<128x16xbf16, #tpu.memory_space<vmem>>, %arg2: memref<16x128xbf16, #tpu.memory_space<vmem>>, %arg3: memref<1x128xf32, #tpu.memory_space<vmem>>, %arg4: memref<1x128xf32, #tpu.memory_space<vmem>>, %arg5: memref<128x128xbf16, #tpu.memory_space<vmem>>) attributes {dimension_semantics = [#tpu.dimension_semantics<parallel>], iteration_bounds = array<i64: 4>, scalar_prefetch = 0 : i64, scratch_operands = 0 : i64, tpu.core_type = #tpu.core_type<tc>, window_params = [{transform_indices = @transform_0, window_bounds = array<i64: 128, 16>}, {pipeline_mode = #tpu.pipeline_mode<synchronous>, transform_indices = @transform_1, window_bounds = array<i64: 16, 128>}, {pipeline_mode = #tpu.pipeline_mode<synchronous>, transform_indices = @transform_2, window_bounds = array<i64: 1, 128>}, {pipeline_mode = #tpu.pipeline_mode<synchronous>, transform_indices = @transform_3, window_bounds = array<i64: 1, 128>}, {transform_indices = @transform_4, window_bounds = array<i64: 128, 128>}]} {
    %c0 = arith.constant 0 : index
    %c0_0 = arith.constant 0 : index
    %0 = vector.load %arg1[%c0, %c0_0] : memref<128x16xbf16, #tpu.memory_space<vmem>>, vector<128x16xbf16>
    %c0_1 = arith.constant 0 : index
    %c0_2 = arith.constant 0 : index
    %1 = vector.load %arg2[%c0_1, %c0_2] : memref<16x128xbf16, #tpu.memory_space<vmem>>, vector<16x128xbf16>
    %cst = arith.constant dense<0.000000e+00> : vector<128x128xf32>
    %2 = tpu.matmul %0, %1, %cst {dimension_numbers = #tpu.dot_dimension_numbers<[1], [0], [0], [1], [0, 0, 1, 1], [], []>} : vector<128x16xbf16>, vector<16x128xbf16>, vector<128x128xf32> -> vector<128x128xf32>
    %c0_3 = arith.constant 0 : index
    %c0_4 = arith.constant 0 : index
    %3 = vector.load %arg3[%c0_3, %c0_4] : memref<1x128xf32, #tpu.memory_space<vmem>>, vector<1x128xf32>
    %4 = vector.broadcast %3 : vector<1x128xf32> to vector<128x128xf32>
    %5 = arith.mulf %2, %4 : vector<128x128xf32>
    %c0_5 = arith.constant 0 : index
    %c0_6 = arith.constant 0 : index
    %6 = vector.load %arg4[%c0_5, %c0_6] : memref<1x128xf32, #tpu.memory_space<vmem>>, vector<1x128xf32>
    %7 = vector.broadcast %6 : vector<1x128xf32> to vector<128x128xf32>
    %8 = arith.addf %5, %7 : vector<128x128xf32>
    %cst_7 = arith.constant 0.000000e+00 : f32
    %9 = vector.broadcast %cst_7 : f32 to vector<128x128xf32>
    %10 = arith.maximumf %8, %9 : vector<128x128xf32>
    %11 = arith.truncf %10 : vector<128x128xf32> to vector<128x128xbf16>
    %c0_8 = arith.constant 0 : index
    %c0_9 = arith.constant 0 : index
    %12 = vector.load %arg5[%c0_8, %c0_9] : memref<128x128xbf16, #tpu.memory_space<vmem>>, vector<128x128xbf16>
    tpu.vector_store %arg5[%c0_8, %c0_9], %11 {strides = array<i32>} : memref<128x128xbf16, #tpu.memory_space<vmem>>, vector<128x128xbf16>,
    return
  }
  func.func @transform_0(%arg0: i32) -> (i32, i32) {
    %c0_i32 = arith.constant 0 : i32
    %c0_i32_0 = arith.constant 0 : i32
    return %arg0, %c0_i32 : i32, i32
  }
  func.func @transform_1(%arg0: i32) -> (i32, i32) {
    %c0_i32 = arith.constant 0 : i32
    %c0_i32_0 = arith.constant 0 : i32
    %c0_i32_1 = arith.constant 0 : i32
    return %c0_i32, %c0_i32_0 : i32, i32
  }
  func.func @transform_2(%arg0: i32) -> (i32, i32) {
    %c0_i32 = arith.constant 0 : i32
    %c0_i32_0 = arith.constant 0 : i32
    %c0_i32_1 = arith.constant 0 : i32
    return %c0_i32, %c0_i32_0 : i32, i32
  }
  func.func @transform_3(%arg0: i32) -> (i32, i32) {
    %c0_i32 = arith.constant 0 : i32
    %c0_i32_0 = arith.constant 0 : i32
    %c0_i32_1 = arith.constant 0 : i32
    return %c0_i32, %c0_i32_0 : i32, i32
  }
  func.func @transform_4(%arg0: i32) -> (i32, i32) {
    %c0_i32 = arith.constant 0 : i32
    %c0_i32_0 = arith.constant 0 : i32
    return %arg0, %c0_i32 : i32, i32
  }
}

module attributes {stable_mosaic.version = 11 : i64} {
  func.func @_mm_bn_add_relu_kernel(%arg0: i32, %arg1: memref<128x128xbf16, #tpu.memory_space<vmem>>, %arg2: memref<128x128xbf16, #tpu.memory_space<vmem>>, %arg3: memref<1x128xf32, #tpu.memory_space<vmem>>, %arg4: memref<1x128xf32, #tpu.memory_space<vmem>>, %arg5: memref<128x16xbf16, #tpu.memory_space<vmem>>, %arg6: memref<16x128xbf16, #tpu.memory_space<vmem>>, %arg7: memref<128x128xf32, #tpu.memory_space<vmem>>) attributes {dimension_semantics = [#tpu.dimension_semantics<parallel>], iteration_bounds = array<i64: 4>, scalar_prefetch = 0 : i64, scratch_operands = 0 : i64, tpu.core_type = #tpu.core_type<tc>, window_params = [{transform_indices = @transform_0, window_bounds = array<i64: 128, 128>}, {pipeline_mode = #tpu.pipeline_mode<synchronous>, transform_indices = @transform_1, window_bounds = array<i64: 128, 128>}, {pipeline_mode = #tpu.pipeline_mode<synchronous>, transform_indices = @transform_2, window_bounds = array<i64: 1, 128>}, {pipeline_mode = #tpu.pipeline_mode<synchronous>, transform_indices = @transform_3, window_bounds = array<i64: 1, 128>}, {transform_indices = @transform_4, window_bounds = array<i64: 128, 16>}, {pipeline_mode = #tpu.pipeline_mode<synchronous>, transform_indices = @transform_5, window_bounds = array<i64: 16, 128>}, {transform_indices = @transform_6, window_bounds = array<i64: 128, 128>}]} {
    %c0 = arith.constant 0 : index
    %c0_0 = arith.constant 0 : index
    %0 = vector.load %arg1[%c0, %c0_0] : memref<128x128xbf16, #tpu.memory_space<vmem>>, vector<128x128xbf16>
    %c0_1 = arith.constant 0 : index
    %c0_2 = arith.constant 0 : index
    %1 = vector.load %arg2[%c0_1, %c0_2] : memref<128x128xbf16, #tpu.memory_space<vmem>>, vector<128x128xbf16>
    %cst = arith.constant dense<0.000000e+00> : vector<128x128xf32>
    %2 = tpu.matmul %0, %1, %cst {dimension_numbers = #tpu.dot_dimension_numbers<[1], [0], [0], [1], [0, 0, 1, 1], [], []>} : vector<128x128xbf16>, vector<128x128xbf16>, vector<128x128xf32> -> vector<128x128xf32>
    %c0_3 = arith.constant 0 : index
    %c0_4 = arith.constant 0 : index
    %3 = vector.load %arg3[%c0_3, %c0_4] : memref<1x128xf32, #tpu.memory_space<vmem>>, vector<1x128xf32>
    %4 = vector.broadcast %3 : vector<1x128xf32> to vector<128x128xf32>
    %5 = arith.mulf %2, %4 : vector<128x128xf32>
    %c0_5 = arith.constant 0 : index
    %c0_6 = arith.constant 0 : index
    %6 = vector.load %arg4[%c0_5, %c0_6] : memref<1x128xf32, #tpu.memory_space<vmem>>, vector<1x128xf32>
    %7 = vector.broadcast %6 : vector<1x128xf32> to vector<128x128xf32>
    %8 = arith.addf %5, %7 : vector<128x128xf32>
    %c0_7 = arith.constant 0 : index
    %c0_8 = arith.constant 0 : index
    %9 = vector.load %arg5[%c0_7, %c0_8] : memref<128x16xbf16, #tpu.memory_space<vmem>>, vector<128x16xbf16>
    %c0_9 = arith.constant 0 : index
    %c0_10 = arith.constant 0 : index
    %10 = vector.load %arg6[%c0_9, %c0_10] : memref<16x128xbf16, #tpu.memory_space<vmem>>, vector<16x128xbf16>
    %cst_11 = arith.constant dense<0.000000e+00> : vector<128x128xf32>
    %11 = tpu.matmul %9, %10, %cst_11 {dimension_numbers = #tpu.dot_dimension_numbers<[1], [0], [0], [1], [0, 0, 1, 1], [], []>} : vector<128x16xbf16>, vector<16x128xbf16>, vector<128x128xf32> -> vector<128x128xf32>
    %12 = arith.addf %8, %11 : vector<128x128xf32>
    %cst_12 = arith.constant 0.000000e+00 : f32
    %13 = vector.broadcast %cst_12 : f32 to vector<128x128xf32>
    %14 = arith.maximumf %12, %13 : vector<128x128xf32>
    %c0_13 = arith.constant 0 : index
    %c0_14 = arith.constant 0 : index
    %15 = vector.load %arg7[%c0_13, %c0_14] : memref<128x128xf32, #tpu.memory_space<vmem>>, vector<128x128xf32>
    tpu.vector_store %arg7[%c0_13, %c0_14], %14 {strides = array<i32>} : memref<128x128xf32, #tpu.memory_space<vmem>>, vector<128x128xf32>,
    return
  }
  func.func @transform_0(%arg0: i32) -> (i32, i32) {
    %c0_i32 = arith.constant 0 : i32
    %c0_i32_0 = arith.constant 0 : i32
    return %arg0, %c0_i32 : i32, i32
  }
  func.func @transform_1(%arg0: i32) -> (i32, i32) {
    %c0_i32 = arith.constant 0 : i32
    %c0_i32_0 = arith.constant 0 : i32
    %c0_i32_1 = arith.constant 0 : i32
    return %c0_i32, %c0_i32_0 : i32, i32
  }
  func.func @transform_2(%arg0: i32) -> (i32, i32) {
    %c0_i32 = arith.constant 0 : i32
    %c0_i32_0 = arith.constant 0 : i32
    %c0_i32_1 = arith.constant 0 : i32
    return %c0_i32, %c0_i32_0 : i32, i32
  }
  func.func @transform_3(%arg0: i32) -> (i32, i32) {
    %c0_i32 = arith.constant 0 : i32
    %c0_i32_0 = arith.constant 0 : i32
    %c0_i32_1 = arith.constant 0 : i32
    return %c0_i32, %c0_i32_0 : i32, i32
  }
  func.func @transform_4(%arg0: i32) -> (i32, i32) {
    %c0_i32 = arith.constant 0 : i32
    %c0_i32_0 = arith.constant 0 : i32
    return %arg0, %c0_i32 : i32, i32
  }
  func.func @transform_5(%arg0: i32) -> (i32, i32) {
    %c0_i32 = arith.constant 0 : i32
    %c0_i32_0 = arith.constant 0 : i32
    %c0_i32_1 = arith.constant 0 : i32
    return %c0_i32, %c0_i32_0 : i32, i32
  }
  func.func @transform_6(%arg0: i32) -> (i32, i32) {
    %c0_i32 = arith.constant 0 : i32
    %c0_i32_0 = arith.constant 0 : i32
    return %arg0, %c0_i32 : i32, i32
  }
}

</mosaic_0001>

<bundles_post_ra>
// kernel: bottleneck_forward.3
= control target key start
LH: loop header
LB: loop body
LE: loop exit
PB: predicated region body
PF: predicated region fallthrough
CT: control target
= control target key end

     0   :  { %s774_s15 = smov 0   ;;  %s861_s0 = inlined_call_operand.vmem [shape: bf16[512,16], index: 0, kind: input, shape index: {}]   ;;  %s862_s1 = inlined_call_operand.vmem [shape: bf16[16,128], index: 1, kind: input, shape index: {}]   ;;  %s863_s2 = inlined_call_operand.vmem [shape: f32[1,128], index: 2, kind: input, shape index: {}]   ;;  %s864_s3 = inlined_call_operand.vmem [shape: f32[1,128], index: 3, kind: input, shape index: {}]   ;;  %s865_s4 = inlined_call_operand.vmem [shape: bf16[512,128], index: 4, kind: output, shape index: {}]  }
   0x1 LB: > { %s586_s16 = sadd.s32 4294967295, %s747_s15   ;;  %p590_p0 = scmp.ge.s32.totalorder %s747_s15, 1  ;;  %s747_s15 = sphi %s774_s15, %s14_s15  }
   0x2   : > { %p163_p1 = scmp.lt.s32.totalorder %s747_s15, 5 }
   0x4   : > { %p164_p2 = pnand %p590_p0, %p163_p1 }
   0x5   : > { %v732_v0 = vld [vmem:[%s862_s1] sm:$0xff] (!%p164_p2)   ;;  %s591_s19 = sshll.u32 (!%p164_p2), %s586_s16, 4  ;;  %vm266_vm0 = vcmask (!%p164_p2), 130048  }
   0x6   : > { %167 = sbr.rel (%p164_p2) target bundleno = 251 (0xfb), region = 36  ;;  %p190_p3 = scmp.lt.s32.totalorder (!%p164_p2), %s591_s19, 63  ;;  %704 = vmatprep.subr.bf16.mxu0 (!%p164_p2), %v732_v0  ;;  %722 = vmatprep.subr.bf16.mxu1 (!%p164_p2), %v732_v0  ;;  %v804_v9 = vld [vmem:[%s863_s2] ss:$0 sm:$0xff] (!%p164_p2) }
   0x7   : > { %705 = vmatpush3.bf16.msra.mxu0 (!%p164_p2), %v732_v0  ;;  %723 = vmatpush3.bf16.msra.mxu1 (!%p164_p2), %v732_v0  ;;  %v809_v11 = vld [vmem:[%s864_s3] ss:$0 sm:$0xff] (!%p164_p2) }
   0xd   : > { %s867_s19 = smov (!%p190_p3, %s591_s19), 63 }
   0xe   : > { %s592_s20 = sshll.u32 %s867_s19, 2 }
   0xf   : > { %s193_s23 = scalar_lea.vmem %s861_s0, %s592_s20  ;;  %s832_s30 = scalar_lea.vmem %s865_s4, %s592_s20 }
  0x10   : > { %v733_v1 = vld [vmem:[%s193_s23] sm:$0xff]   ;;  %v735_v3 = vld [vmem:[%s193_s23 + $0x8] sm:$0xff]   ;;  %v737_v5 = vld [vmem:[%s193_s23 + $0x10] sm:$0xff]  }
  0x11   : > { %v734_v2 = vld [vmem:[%s193_s23 + $0x20] sm:$0xff]   ;;  %706 = vmatprep.mubr.msk.bf16.mxu0 %vm266_vm0, %v733_v1  ;;  %v736_v4 = vld [vmem:[%s193_s23 + $0x28] sm:$0xff]   ;;  %v738_v6 = vld [vmem:[%s193_s23 + $0x30] sm:$0xff]  }
  0x12   : > { %714 = vmatprep.mubr.msk.bf16.mxu1 %vm266_vm0, %v734_v2  ;;  %707 = vmatmul.mubr.msk.bf16.vlgmr.msra.gmra.mrb[0].mxu0 %vm266_vm0, %v735_v3  ;;  %v739_v7 = vld [vmem:[%s193_s23 + $0x18] sm:$0xff]  }
  0x13   : > { %715 = vmatmul.mubr.msk.bf16.vlgmr.msra.gmra.mrb[0].mxu1 %vm266_vm0, %v736_v4  ;;  %710 = vmatprep.mubr.msk.bf16.mxu0 %vm266_vm0, %v737_v5  ;;  %v740_v8 = vld [vmem:[%s193_s23 + $0x38] sm:$0xff]  }
  0x14   : > { %718 = vmatprep.mubr.msk.bf16.mxu1 %vm266_vm0, %v738_v6 }
  0x1a   : > { %711 = vmatmul.mubr.msk.bf16.gmra.mrb[4].mxu0 %vm266_vm0, %v739_v7 }
  0x1b   : > { %719 = vmatmul.mubr.msk.bf16.gmra.mrb[4].mxu1 %vm266_vm0, %v740_v8 }
  0xe5   : > { %v708_v10 = vpop.f32.mrb[0].mxu0 }
  0xe6   : > { %v397_v12 = vmul.f32 %v708_v10, %v804_v9  ;;  %v716_v13 = vpop.f32.mrb[0].mxu1  ;;  %v325_v14 = vpop.f32.mrb[1].mxu0 }
  0xe7   : > { %v405_v15 = vmul.f32 %v716_v13, %v804_v9  ;;  %v395_v16 = vmul.f32 %v804_v9, %v325_v14  ;;  %v357_v17 = vpop.f32.mrb[1].mxu1  ;;  %v709_v18 = vpop.f32.mrb[2].mxu0 }
  0xe8   : > { %v420_v19 = vadd.f32 %v809_v11, %v397_v12  ;;  %v403_v20 = vmul.f32 %v804_v9, %v357_v17  ;;  %v398_v21 = vmul.f32 %v709_v18, %v804_v9  ;;  %v717_v22 = vpop.f32.mrb[2].mxu1  ;;  %v328_v23 = vpop.f32.mrb[3].mxu0 }
  0xe9   : > { %v428_v24 = vadd.f32 %v809_v11, %v405_v15  ;;  %v418_v25 = vadd.f32 %v809_v11, %v395_v16  ;;  %v406_v26 = vmul.f32 %v717_v22, %v804_v9  ;;  %v396_v27 = vmul.f32 %v804_v9, %v328_v23  ;;  %v360_v28 = vpop.f32.mrb[3].mxu1 }
  0xea   : > { %v426_v29 = vadd.f32 %v809_v11, %v403_v20  ;;  %v421_v30 = vadd.f32 %v809_v11, %v398_v21  ;;  %v404_v31 = vmul.f32 %v804_v9, %v360_v28  ;;  %v436_v34 = vmax.f32 %v420_v19, 0.0 }
  0xeb   : > { %v429_v32 = vadd.f32 %v809_v11, %v406_v26  ;;  %v419_v33 = vadd.f32 %v809_v11, %v396_v27  ;;  %v444_v37 = vmax.f32 %v428_v24, 0.0  ;;  %v434_v38 = vmax.f32 %v418_v25, 0.0 }
  0xec   : > { %v437_v35 = vmax.f32 %v421_v30, 0.0  ;;  %v427_v36 = vadd.f32 %v809_v11, %v404_v31  ;;  %v442_v42 = vmax.f32 %v426_v29, 0.0 }
  0xed   : > { %v445_v39 = vmax.f32 %v429_v32, 0.0  ;;  %v435_v40 = vmax.f32 %v419_v33, 0.0  ;;  %v712_v41 = vpop.f32.mrb[4].mxu0 }
  0xee   : > { %v656_v43 = vpack.c.bf16 %v437_v35, %v436_v34  ;;  %v443_v44 = vmax.f32 %v427_v36, 0.0  ;;  %v401_v45 = vmul.f32 %v712_v41, %v804_v9  ;;  %v720_v46 = vpop.f32.mrb[4].mxu1  ;;  %v341_v47 = vpop.f32.mrb[5].mxu0 }
  0xef   : > { %v676_v48 = vpack.c.bf16 %v445_v39, %v444_v37  ;;  %v651_v49 = vpack.c.bf16 %v435_v40, %v434_v38  ;;  %v409_v50 = vmul.f32 %v720_v46, %v804_v9  ;;  %v399_v51 = vmul.f32 %v804_v9, %v341_v47  ;;  %v373_v52 = vpop.f32.mrb[5].mxu1  ;;  %v713_v53 = vpop.f32.mrb[6].mxu0 }
  0xf0   : > { %688 = vst [vmem:[%s832_s30 + $0x8] sm:$0xff] %v656_v43   ;;  %v671_v54 = vpack.c.bf16 %v443_v44, %v442_v42  ;;  %v424_v55 = vadd.f32 %v809_v11, %v401_v45  ;;  %v407_v56 = vmul.f32 %v804_v9, %v373_v52  ;;  %v402_v57 = vmul.f32 %v713_v53, %v804_v9  ;;  %v721_v58 = vpop.f32.mrb[6].mxu1  ;;  %v344_v59 = vpop.f32.mrb[7].mxu0 }
  0xf1   : > { %692 = vst [vmem:[%s832_s30 + $0x28] sm:$0xff] %v676_v48   ;;  %652 = vst [vmem:[%s832_s30] sm:$0xff] %v651_v49   ;;  %v432_v60 = vadd.f32 %v809_v11, %v409_v50  ;;  %v422_v61 = vadd.f32 %v809_v11, %v399_v51  ;;  %v410_v62 = vmul.f32 %v721_v58, %v804_v9  ;;  %v376_v0 = vpop.f32.mrb[7].mxu1 }
  0xf2   : > { %v400_v63 = vmul.f32 %v804_v9, %v344_v59  ;;  %691 = vst [vmem:[%s832_s30 + $0x20] sm:$0xff] %v671_v54   ;;  %v430_v1 = vadd.f32 %v809_v11, %v407_v56  ;;  %v425_v2 = vadd.f32 %v809_v11, %v402_v57  ;;  %v408_v3 = vmul.f32 %v804_v9, %v376_v0 }
  0xf3   : > { %v433_v4 = vadd.f32 %v809_v11, %v410_v62  ;;  %v440_v6 = vmax.f32 %v424_v55, 0.0  ;;  %v448_v10 = vmax.f32 %v432_v60, 0.0  ;;  %v438_v12 = vmax.f32 %v422_v61, 0.0 }
  0xf4   : > { %v423_v5 = vadd.f32 %v809_v11, %v400_v63  ;;  %v441_v7 = vmax.f32 %v425_v2, 0.0  ;;  %v431_v8 = vadd.f32 %v809_v11, %v408_v3  ;;  %v446_v15 = vmax.f32 %v430_v1, 0.0 }
  0xf5   : > { %v449_v13 = vmax.f32 %v433_v4, 0.0 }
  0xf6   : > { %v439_v14 = vmax.f32 %v423_v5, 0.0  ;;  %v666_v16 = vpack.c.bf16 %v441_v7, %v440_v6  ;;  %v447_v17 = vmax.f32 %v431_v8, 0.0 }
  0xf7   : > { %v686_v18 = vpack.c.bf16 %v449_v13, %v448_v10 }
  0xf8   : > { %v661_v9 = vpack.c.bf16 %v439_v14, %v438_v12  ;;  %690 = vst [vmem:[%s832_s30 + $0x18] sm:$0xff] %v666_v16   ;;  %v681_v19 = vpack.c.bf16 %v447_v17, %v446_v15 }
  0xf9   : > { %694 = vst [vmem:[%s832_s30 + $0x38] sm:$0xff] %v686_v18  }
  0xfa   : > { %689 = vst [vmem:[%s832_s30 + $0x10] sm:$0xff] %v661_v9   ;;  %693 = vst [vmem:[%s832_s30 + $0x30] sm:$0xff] %v681_v19  }
  0xfb PF: > { %s14_s15 = sadd.s32 1, %s747_s15  }
  0xfc   : > { %p11_p4 = scmp.ge.s32.totalorder %s14_s15, 6  }
  0xfe   :  { %13 = sbr.rel (!%p11_p4) target bundleno = 1 (0x1), region = 66 }

// kernel: bottleneck_forward.5
= control target key start
LH: loop header
LB: loop body
LE: loop exit
PB: predicated region body
PF: predicated region fallthrough
CT: control target
= control target key end

     0   :  { %s1050_s21 = smov 0   ;;  %s1213_s0 = inlined_call_operand.vmem [shape: bf16[512,128], index: 0, kind: input, shape index: {}]   ;;  %s1214_s1 = inlined_call_operand.vmem [shape: bf16[128,128], index: 1, kind: input, shape index: {}]   ;;  %s1215_s2 = inlined_call_operand.vmem [shape: f32[1,128], index: 2, kind: input, shape index: {}]   ;;  %s1216_s3 = inlined_call_operand.vmem [shape: f32[1,128], index: 3, kind: input, shape index: {}]   ;;  %s1217_s4 = inlined_call_operand.vmem [shape: bf16[512,16], index: 4, kind: input, shape index: {}]   ;;  %s1218_s5 = inlined_call_operand.vmem [shape: bf16[16,128], index: 5, kind: input, shape index: {}]   ;;  %s1219_s6 = inlined_call_operand.vmem [shape: f32[512,128], index: 6, kind: output, shape index: {}]  }
   0x1 LB: > { %s851_s22 = sadd.s32 4294967295, %s1013_s21   ;;  %p855_p0 = scmp.ge.s32.totalorder %s1013_s21, 1  ;;  %s1013_s21 = sphi %s1050_s21, %s16_s21  }
   0x2   : > { %p224_p1 = scmp.lt.s32.totalorder %s1013_s21, 5 }
   0x4   : > { %p225_p2 = pnand %p855_p0, %p224_p1 }
   0x5   : > { %v982_v0 = vld [vmem:[%s1214_s1] sm:$0xff] (!%p225_p2)   ;;  %s856_s25 = sshll.u32 (!%p225_p2), %s851_s22, 4  ;;  %v983_v1 = vld [vmem:[%s1214_s1 + $0x8] sm:$0xff] (!%p225_p2)   ;;  %v984_v2 = vld [vmem:[%s1214_s1 + $0x10] sm:$0xff] (!%p225_p2)   ;;  %vm613_vm0 = vcmask (!%p225_p2), 130048  }
   0x6   : > { %228 = sbr.rel (%p225_p2) target bundleno = 286 (0x11e), region = 44  ;;  %p260_p3 = scmp.lt.s32.totalorder (!%p225_p2), %s856_s25, 63  ;;  %924 = vmatprep.subr.bf16.mxu0 (!%p225_p2), %v982_v0  ;;  %v985_v3 = vld [vmem:[%s1214_s1 + $0x18] sm:$0xff] (!%p225_p2)   ;;  %v990_v4 = vld [vmem:[%s1218_s5] sm:$0xff] (!%p225_p2)   ;;  %v987_v10 = vld [vmem:[%s1214_s1 + $0x28] sm:$0xff] (!%p225_p2)  }
   0x7   : > { %925 = vmatpush3.bf16.msra.mxu0 (!%p225_p2), %v982_v0  ;;  %v986_v6 = vld [vmem:[%s1214_s1 + $0x20] sm:$0xff] (!%p225_p2)   ;;  %956 = vmatprep.subr.bf16.mxu1 (!%p225_p2), %v990_v4  ;;  %v988_v13 = vld [vmem:[%s1214_s1 + $0x30] sm:$0xff] (!%p225_p2)   ;;  %v989_v14 = vld [vmem:[%s1214_s1 + $0x38] sm:$0xff] (!%p225_p2)  }
   0x8   : > { %926 = vmatprep.subr.bf16.mxu0 (!%p225_p2), %v983_v1  ;;  %957 = vmatpush3.bf16.msra.mxu1 (!%p225_p2), %v990_v4  ;;  %v1129_v35 = vld [vmem:[%s1215_s2] ss:$0 sm:$0xff] (!%p225_p2) }
   0x9   : > { %v1138_v39 = vld [vmem:[%s1216_s3] ss:$0 sm:$0xff] (!%p225_p2) }
   0xb   : > { %927 = vmatpush3.bf16.msra.mxu0 (!%p225_p2), %v983_v1 }
   0xc   : > { %928 = vmatprep.subr.bf16.mxu0 (!%p225_p2), %v984_v2 }
   0xd   : > { %s1221_s25 = smov (!%p260_p3, %s856_s25), 63 }
   0xe   : > { %s857_s30 = sshll.u32 %s1221_s25, 2  ;;  %s861_s7 = sshll.u32 %s1221_s25, 3 }
   0xf   : > { %s1073_s9 = scalar_lea.vmem %s1213_s0, %s857_s30  ;;  %s1084_s16 = scalar_lea.vmem %s1217_s4, %s857_s30  ;;  %929 = vmatpush3.bf16.msra.mxu0 %v984_v2 }
  0x10   : > { %v991_v5 = vld [vmem:[%s1073_s9] sm:$0xff]   ;;  %930 = vmatprep.subr.bf16.mxu0 %v985_v3  ;;  %v994_v8 = vld [vmem:[%s1084_s16 + $0x8] sm:$0xff]   ;;  %v997_v9 = vld [vmem:[%s1084_s16 + $0x10] sm:$0xff]   ;;  %s1155_s25 = scalar_lea.vmem %s1219_s6, %s861_s7 }
  0x11   : > { %v993_v7 = vld [vmem:[%s1084_s16] sm:$0xff]   ;;  %940 = vmatprep.mubr.bf16.mxu0 %v991_v5  ;;  %v998_v11 = vld [vmem:[%s1084_s16 + $0x18] sm:$0xff]   ;;  %v1002_v15 = vld [vmem:[%s1084_s16 + $0x28] sm:$0xff]  }
  0x12   : > { %958 = vmatprep.mubr.msk.bf16.mxu1 %vm613_vm0, %v993_v7  ;;  %v1001_v12 = vld [vmem:[%s1084_s16 + $0x20] sm:$0xff]   ;;  %v1005_v16 = vld [vmem:[%s1084_s16 + $0x30] sm:$0xff]   ;;  %v992_v17 = vld [vmem:[%s1073_s9 + $0x8] sm:$0xff]  }
  0x13   : > { %959 = vmatmul.mubr.msk.bf16.vlgmr.msra.gmra.mrb[0].mxu1 %vm613_vm0, %v994_v8  ;;  %931 = vmatpush3.bf16.msra.mxu0 %v985_v3  ;;  %v995_v18 = vld [vmem:[%s1073_s9 + $0x10] sm:$0xff]   ;;  %v1006_v19 = vld [vmem:[%s1084_s16 + $0x38] sm:$0xff]   ;;  %v999_v21 = vld [vmem:[%s1073_s9 + $0x20] sm:$0xff]  }
  0x14   : > { %932 = vmatprep.subr.bf16.mxu0 %v986_v6  ;;  %962 = vmatprep.mubr.msk.bf16.mxu1 %vm613_vm0, %v997_v9  ;;  %v996_v20 = vld [vmem:[%s1073_s9 + $0x18] sm:$0xff]   ;;  %v1000_v22 = vld [vmem:[%s1073_s9 + $0x28] sm:$0xff]   ;;  %v1003_v23 = vld [vmem:[%s1073_s9 + $0x30] sm:$0xff]  }
  0x15   : > { %v1004_v24 = vld [vmem:[%s1073_s9 + $0x38] sm:$0xff]  }
  0x17   : > { %933 = vmatpush3.bf16.msra.mxu0 %v986_v6 }
  0x18   : > { %934 = vmatprep.subr.bf16.mxu0 %v987_v10 }
  0x1b   : > { %963 = vmatmul.mubr.msk.bf16.gmra.mrb[4].mxu1 %vm613_vm0, %v998_v11  ;;  %935 = vmatpush3.bf16.msra.mxu0 %v987_v10 }
  0x1c   : > { %966 = vmatprep.mubr.msk.bf16.mxu1 %vm613_vm0, %v1001_v12  ;;  %936 = vmatprep.subr.bf16.mxu0 %v988_v13 }
  0x1f   : > { %937 = vmatpush3.bf16.msra.mxu0 %v988_v13 }
  0x20   : > { %938 = vmatprep.subr.bf16.mxu0 %v989_v14 }
  0x23   : > { %967 = vmatmul.mubr.msk.bf16.gmra.mrb[8].mxu1 %vm613_vm0, %v1002_v15  ;;  %939 = vmatpush3.bf16.msra.mxu0 %v989_v14 }
  0x24   : > { %970 = vmatprep.mubr.msk.bf16.mxu1 %vm613_vm0, %v1005_v16 }
  0x26   : > { %941 = vmatmul.mubr.bf16.vlgmr.msra.gmra.mrb[0].mxu0 %v992_v17 }
  0x27   : > { %944 = vmatprep.mubr.bf16.mxu0 %v995_v18 }
  0x2b   : > { %971 = vmatmul.mubr.msk.bf16.gmra.mrb[12].mxu1 %vm613_vm0, %v1006_v19 }
  0x2e   : > { %945 = vmatmul.mubr.bf16.gmra.mrb[4].mxu0 %v996_v20 }
  0x2f   : > { %948 = vmatprep.mubr.bf16.mxu0 %v999_v21 }
  0x36   : > { %949 = vmatmul.mubr.bf16.gmra.mrb[8].mxu0 %v1000_v22 }
  0x37   : > { %952 = vmatprep.mubr.bf16.mxu0 %v1003_v23 }
  0x3e   : > { %953 = vmatmul.mubr.bf16.gmra.mrb[12].mxu0 %v1004_v24 }
  0xe6   : > { %v960_v25 = vpop.f32.mrb[0].mxu1 }
  0xe7   : > { %v672_v26 = vpop.f32.mrb[1].mxu1 }
  0xe8   : > { %v961_v27 = vpop.f32.mrb[2].mxu1 }
  0xe9   : > { %v675_v28 = vpop.f32.mrb[3].mxu1 }
  0xee   : > { %v964_v29 = vpop.f32.mrb[4].mxu1 }
  0xef   : > { %v688_v30 = vpop.f32.mrb[5].mxu1 }
  0xf0   : > { %v965_v31 = vpop.f32.mrb[6].mxu1 }
  0xf1   : > { %v691_v32 = vpop.f32.mrb[7].mxu1 }
  0xf6   : > { %v1122_v33 = vpop.f32.mrb[8].mxu1 }
  0xf7   : > { %v1124_v34 = vpop.f32.mrb[9].mxu1 }
  0xf8   : > { %v1131_v36 = vpop.f32.mrb[10].mxu1 }
  0xf9   : > { %v1133_v37 = vpop.f32.mrb[11].mxu1  ;;  %v942_v38 = vpop.f32.mrb[0].mxu0 }
  0xfa   : > { %v512_v40 = vmul.f32 %v942_v38, %v1129_v35  ;;  %v440_v41 = vpop.f32.mrb[1].mxu0 }
  0xfb   : > { %v510_v42 = vmul.f32 %v1129_v35, %v440_v41  ;;  %v943_v43 = vpop.f32.mrb[2].mxu0 }
  0xfc   : > { %v535_v44 = vadd.f32 %v1138_v39, %v512_v40  ;;  %v513_v45 = vmul.f32 %v943_v43, %v1129_v35  ;;  %v443_v46 = vpop.f32.mrb[3].mxu0 }
  0xfd   : > { %v533_v47 = vadd.f32 %v1138_v39, %v510_v42  ;;  %v511_v48 = vmul.f32 %v1129_v35, %v443_v46 }
  0xfe   : > { %v1147_v49 = vpop.f32.mrb[12].mxu1  ;;  %v737_v50 = vadd.f32 %v960_v25, %v535_v44  ;;  %v536_v51 = vadd.f32 %v1138_v39, %v513_v45 }
  0xff   : > { %v1150_v52 = vpop.f32.mrb[13].mxu1  ;;  %v735_v53 = vadd.f32 %v672_v26, %v533_v47  ;;  %v534_v54 = vadd.f32 %v1138_v39, %v511_v48 }
 0x100   : > { %v1158_v55 = vpop.f32.mrb[14].mxu1  ;;  %v753_v56 = vmax.f32 %v737_v50, 0.0  ;;  %v738_v57 = vadd.f32 %v961_v27, %v536_v51 }
 0x101   : > { %v1160_v58 = vpop.f32.mrb[15].mxu1  ;;  %v751_v59 = vmax.f32 %v735_v53, 0.0  ;;  %v736_v60 = vadd.f32 %v675_v28, %v534_v54  ;;  %v946_v61 = vpop.f32.mrb[4].mxu0 }
 0x102   : > { %769 = vst [vmem:[%s1155_s25 + $0x10] sm:$0xff] %v753_v56  ;;  %v754_v62 = vmax.f32 %v738_v57, 0.0  ;;  %v516_v63 = vmul.f32 %v946_v61, %v1129_v35  ;;  %v456_v0 = vpop.f32.mrb[5].mxu0 }
 0x103   : > { %767 = vst [vmem:[%s1155_s25] sm:$0xff] %v751_v59  ;;  %v752_v1 = vmax.f32 %v736_v60, 0.0  ;;  %v514_v2 = vmul.f32 %v1129_v35, %v456_v0  ;;  %v947_v3 = vpop.f32.mrb[6].mxu0 }
 0x104   : > { %770 = vst [vmem:[%s1155_s25 + $0x18] sm:$0xff] %v754_v62  ;;  %v539_v4 = vadd.f32 %v1138_v39, %v516_v63  ;;  %v517_v5 = vmul.f32 %v947_v3, %v1129_v35  ;;  %v459_v6 = vpop.f32.mrb[7].mxu0 }
 0x105   : > { %768 = vst [vmem:[%s1155_s25 + $0x8] sm:$0xff] %v752_v1  ;;  %v537_v7 = vadd.f32 %v1138_v39, %v514_v2  ;;  %v515_v8 = vmul.f32 %v1129_v35, %v459_v6 }
 0x106   : > { %v741_v9 = vadd.f32 %v964_v29, %v539_v4  ;;  %v540_v10 = vadd.f32 %v1138_v39, %v517_v5 }
 0x107   : > { %v739_v11 = vadd.f32 %v688_v30, %v537_v7  ;;  %v538_v12 = vadd.f32 %v1138_v39, %v515_v8 }
 0x108   : > { %v757_v13 = vmax.f32 %v741_v9, 0.0  ;;  %v742_v14 = vadd.f32 %v965_v31, %v540_v10 }
 0x109   : > { %v755_v15 = vmax.f32 %v739_v11, 0.0  ;;  %v740_v16 = vadd.f32 %v691_v32, %v538_v12  ;;  %v950_v17 = vpop.f32.mrb[8].mxu0 }
 0x10a   : > { %773 = vst [vmem:[%s1155_s25 + $0x30] sm:$0xff] %v757_v13  ;;  %v758_v18 = vmax.f32 %v742_v14, 0.0  ;;  %v520_v19 = vmul.f32 %v950_v17, %v1129_v35  ;;  %v472_v20 = vpop.f32.mrb[9].mxu0 }
 0x10b   : > { %771 = vst [vmem:[%s1155_s25 + $0x20] sm:$0xff] %v755_v15  ;;  %v756_v21 = vmax.f32 %v740_v16, 0.0  ;;  %v518_v22 = vmul.f32 %v1129_v35, %v472_v20  ;;  %v951_v23 = vpop.f32.mrb[10].mxu0 }
 0x10c   : > { %774 = vst [vmem:[%s1155_s25 + $0x38] sm:$0xff] %v758_v18  ;;  %v543_v24 = vadd.f32 %v1138_v39, %v520_v19  ;;  %v521_v25 = vmul.f32 %v951_v23, %v1129_v35  ;;  %v475_v26 = vpop.f32.mrb[11].mxu0 }
 0x10d   : > { %772 = vst [vmem:[%s1155_s25 + $0x28] sm:$0xff] %v756_v21  ;;  %v541_v27 = vadd.f32 %v1138_v39, %v518_v22  ;;  %v519_v28 = vmul.f32 %v1129_v35, %v475_v26 }
 0x10e   : > { %v745_v29 = vadd.f32 %v1122_v33, %v543_v24  ;;  %v544_v30 = vadd.f32 %v1138_v39, %v521_v25 }
 0x10f   : > { %v743_v31 = vadd.f32 %v1124_v34, %v541_v27  ;;  %v542_v32 = vadd.f32 %v1138_v39, %v519_v28 }
 0x110   : > { %v761_v38 = vmax.f32 %v745_v29, 0.0  ;;  %v746_v40 = vadd.f32 %v1131_v36, %v544_v30 }
 0x111   : > { %v759_v41 = vmax.f32 %v743_v31, 0.0  ;;  %v744_v42 = vadd.f32 %v1133_v37, %v542_v32  ;;  %v954_v43 = vpop.f32.mrb[12].mxu0 }
 0x112   : > { %777 = vst [vmem:[%s1155_s25 + $0x50] sm:$0xff] %v761_v38  ;;  %v762_v44 = vmax.f32 %v746_v40, 0.0  ;;  %v524_v45 = vmul.f32 %v954_v43, %v1129_v35  ;;  %v488_v33 = vpop.f32.mrb[13].mxu0 }
 0x113   : > { %775 = vst [vmem:[%s1155_s25 + $0x40] sm:$0xff] %v759_v41  ;;  %v760_v46 = vmax.f32 %v744_v42, 0.0  ;;  %v522_v47 = vmul.f32 %v1129_v35, %v488_v33  ;;  %v955_v34 = vpop.f32.mrb[14].mxu0 }
 0x114   : > { %778 = vst [vmem:[%s1155_s25 + $0x58] sm:$0xff] %v762_v44  ;;  %v547_v48 = vadd.f32 %v1138_v39, %v524_v45  ;;  %v525_v36 = vmul.f32 %v955_v34, %v1129_v35  ;;  %v491_v50 = vpop.f32.mrb[15].mxu0 }
 0x115   : > { %776 = vst [vmem:[%s1155_s25 + $0x48] sm:$0xff] %v760_v46  ;;  %v545_v37 = vadd.f32 %v1138_v39, %v522_v47  ;;  %v523_v51 = vmul.f32 %v1129_v35, %v491_v50 }
 0x116   : > { %v749_v53 = vadd.f32 %v1147_v49, %v547_v48  ;;  %v548_v54 = vadd.f32 %v1138_v39, %v525_v36 }
 0x117   : > { %v747_v56 = vadd.f32 %v1150_v52, %v545_v37  ;;  %v546_v57 = vadd.f32 %v1138_v39, %v523_v51 }
 0x118   : > { %v765_v59 = vmax.f32 %v749_v53, 0.0  ;;  %v750_v60 = vadd.f32 %v1158_v55, %v548_v54 }
 0x119   : > { %v763_v61 = vmax.f32 %v747_v56, 0.0  ;;  %v748_v62 = vadd.f32 %v1160_v58, %v546_v57 }
 0x11a   : > { %781 = vst [vmem:[%s1155_s25 + $0x70] sm:$0xff] %v765_v59  ;;  %v766_v63 = vmax.f32 %v750_v60, 0.0 }
 0x11b   : > { %779 = vst [vmem:[%s1155_s25 + $0x60] sm:$0xff] %v763_v61  ;;  %v764_v0 = vmax.f32 %v748_v62, 0.0 }
 0x11c   : > { %782 = vst [vmem:[%s1155_s25 + $0x78] sm:$0xff] %v766_v63 }
 0x11d   : > { %780 = vst [vmem:[%s1155_s25 + $0x68] sm:$0xff] %v764_v0 }
 0x11e PF: > { %s16_s21 = sadd.s32 1, %s1013_s21  }
 0x11f   : > { %p13_p4 = scmp.ge.s32.totalorder %s16_s21, 6  }
 0x121   :  { %15 = sbr.rel (!%p13_p4) target bundleno = 1 (0x1), region = 77 }

// kernel: bottleneck_forward.4
= control target key start
LH: loop header
LB: loop body
LE: loop exit
PB: predicated region body
PF: predicated region fallthrough
CT: control target
= control target key end

     0   :  { %s4865_s15 = smov 0   ;;  %s5656_s0 = inlined_call_operand.vmem [shape: bf16[2,16,16,128], index: 0, kind: input, shape index: {}]   ;;  %s5657_s1 = inlined_call_operand.vmem [shape: bf16[9,128,128], index: 1, kind: input, shape index: {}]   ;;  %s5658_s2 = inlined_call_operand.vmem [shape: f32[1,128], index: 2, kind: input, shape index: {}]   ;;  %s5659_s3 = inlined_call_operand.vmem [shape: f32[1,128], index: 3, kind: input, shape index: {}]   ;;  %s5660_s4 = inlined_call_operand.vmem [shape: bf16[2,16,16,128], index: 4, kind: output, shape index: {}]  }
   0x1 LB: > { %s3366_s16 = sadd.s32 4294967295, %s4835_s15   ;;  %p3370_p0 = scmp.ge.s32.totalorder %s4835_s15, 1  ;;  %s4835_s15 = sphi %s4865_s15, %s14_s15  }
   0x2   : > { %p162_p1 = scmp.lt.s32.totalorder %s4835_s15, 3 }
   0x4   : > { %p163_p2 = pnand %p3370_p0, %p162_p1 }
   0x5   : > { %v4748_v0 = vld [vmem:[%s5657_s1 + $0x40] sm:$0xff] (!%p163_p2)   ;;  %v4837_v2 = vmov (!%p163_p2), 0.0   ;;  %v4750_v3 = vld [vmem:[%s5657_s1 + $0x48] sm:$0xff] (!%p163_p2)   ;;  %p188_p3 = scmp.lt.s32.totalorder (!%p163_p2), %s3366_s16, 1  ;;  %v4752_v5 = vld [vmem:[%s5657_s1 + $0x50] sm:$0xff] (!%p163_p2)   ;;  %v4838_v12 = vmov (!%p163_p2), 0  }
   0x6   : > { %166 = sbr.rel (%p163_p2) target bundleno = 556 (0x22c), region = 36  ;;  %v4749_v1 = vld [vmem:[%s5657_s1 + $0x100] sm:$0xff] (!%p163_p2)   ;;  %199 = vst [vmem:[#allocation2] sm:$0xff] (!%p163_p2), %v4837_v2  ;;  %201 = vst [vmem:[#allocation2 + $0x10] sm:$0x3] (!%p163_p2), %v4837_v2  ;;  %4035 = vmatprep.subr.bf16.mxu1 (!%p163_p2), %v4748_v0  ;;  %v4751_v4 = vld [vmem:[%s5657_s1 + $0x108] sm:$0xff] (!%p163_p2)  }
   0x7   : > { %202 = vst [vmem:[#allocation2 + $0x18] sm:$0xff] (!%p163_p2), %v4837_v2  ;;  %203 = vst [vmem:[#allocation2 + $0x20] sm:$0xff] (!%p163_p2), %v4837_v2  ;;  %4227 = vmatprep.subr.bf16.mxu0 (!%p163_p2), %v4749_v1  ;;  %4036 = vmatpush3.bf16.msra.mxu1 (!%p163_p2), %v4748_v0  ;;  %v4753_v6 = vld [vmem:[%s5657_s1 + $0x110] sm:$0xff] (!%p163_p2)   ;;  %v4754_v7 = vld [vmem:[%s5657_s1 + $0x58] sm:$0xff] (!%p163_p2)   ;;  %v462_v13 = vrot.slane (!%p163_p2), %v4838_v12, 1  ;;  %vm1132_vm1 = vcmask (!%p163_p2), 1046528  }
   0x8   : > { %204 = vst [vmem:[#allocation2 + $0x28] sm:$0x3] (!%p163_p2), %v4837_v2  ;;  %205 = vst [vmem:[#allocation2 + $0x30] sm:$0xff] (!%p163_p2), %v4837_v2  ;;  %4228 = vmatpush3.bf16.msra.mxu0 (!%p163_p2), %v4749_v1  ;;  %4037 = vmatprep.subr.bf16.mxu1 (!%p163_p2), %v4750_v3  ;;  %v4755_v8 = vld [vmem:[%s5657_s1 + $0x118] sm:$0xff] (!%p163_p2)   ;;  %v4756_v9 = vld [vmem:[%s5657_s1 + $0x60] sm:$0xff] (!%p163_p2)  }
   0x9   : > { %206 = vst [vmem:[#allocation2 + $0x38] sm:$0xff] (!%p163_p2), %v4837_v2  ;;  %207 = vst [vmem:[#allocation2 + $0x40] sm:$0x3] (!%p163_p2), %v4837_v2  ;;  %4229 = vmatprep.subr.bf16.mxu0 (!%p163_p2), %v4751_v4  ;;  %v4757_v10 = vld [vmem:[%s5657_s1 + $0x120] sm:$0xff] (!%p163_p2)   ;;  %v4758_v11 = vld [vmem:[%s5657_s1 + $0x68] sm:$0xff] (!%p163_p2)  }
   0xa   : > { %208 = vst [vmem:[#allocation2 + $0x48] sm:$0xff] (!%p163_p2), %v4837_v2  ;;  %209 = vst [vmem:[#allocation2 + $0x50] sm:$0xff] (!%p163_p2), %v4837_v2  ;;  %v4759_v14 = vld [vmem:[%s5657_s1 + $0x128] sm:$0xff] (!%p163_p2)   ;;  %vm456_vm0 = vsmask.f32 (!%p163_p2), 7424  ;;  %v4760_v23 = vld [vmem:[%s5657_s1 + $0x70] sm:$0xff] (!%p163_p2)  }
   0xb   : > { %210 = vst [vmem:[#allocation2 + $0x58] sm:$0x3] (!%p163_p2), %v4837_v2  ;;  %211 = vst [vmem:[#allocation2 + $0x60] sm:$0xff] (!%p163_p2), %v4837_v2  ;;  %4038 = vmatpush3.bf16.msra.mxu1 (!%p163_p2), %v4750_v3  ;;  %v4761_v26 = vld [vmem:[%s5657_s1 + $0x130] sm:$0xff] (!%p163_p2)   ;;  %v4762_v33 = vld [vmem:[%s5657_s1 + $0x78] sm:$0xff] (!%p163_p2)  }
   0xc   : > { %212 = vst [vmem:[#allocation2 + $0x68] sm:$0xff] (!%p163_p2), %v4837_v2  ;;  %213 = vst [vmem:[#allocation2 + $0x70] sm:$0x3] (!%p163_p2), %v4837_v2  ;;  %4230 = vmatpush3.bf16.msra.mxu0 (!%p163_p2), %v4751_v4  ;;  %4039 = vmatprep.subr.bf16.mxu1 (!%p163_p2), %v4752_v5  ;;  %v4763_v36 = vld [vmem:[%s5657_s1 + $0x138] sm:$0xff] (!%p163_p2)   ;;  %v4764_v50 = vld [vmem:[%s5657_s1] sm:$0xff] (!%p163_p2)  }
   0xd   : > { %214 = vst [vmem:[#allocation2 + $0x78] sm:$0xff] %v4837_v2  ;;  %215 = vst [vmem:[#allocation2 + $0x80] sm:$0xff] %v4837_v2  ;;  %s5662_s16 = smov (!%p188_p3, %s3366_s16), 1  ;;  %4231 = vmatprep.subr.bf16.mxu0 %v4753_v6  ;;  %v352_v15 = vld [vmem:[#allocation2 + $0x10] sm:$0x3]  ;;  %v4765_v56 = vld [vmem:[%s5657_s1 + $0x140] sm:$0xff]  }
   0xe   : > { %216 = vst [vmem:[#allocation2 + $0x88] sm:$0x3] %v4837_v2  ;;  %217 = vst [vmem:[#allocation2 + $0x90] sm:$0xff] %v4837_v2  ;;  %s3611_s7 = sshll.u32 %s5662_s16, 7  ;;  %v4924_v17 = vpack.c.bf16 %v352_v15, %v352_v15 }
   0xf   : > { %218 = vst [vmem:[#allocation2 + $0x98] sm:$0xff] %v4837_v2  ;;  %219 = vst [vmem:[#allocation2 + $0xa0] sm:$0x3] %v4837_v2  ;;  %4040 = vmatpush3.bf16.msra.mxu1 %v4752_v5  ;;  %s4915_s14 = scalar_lea.vmem %s5656_s0, %s3611_s7 }
  0x10   : > { %220 = vst [vmem:[#allocation2 + $0xa8] sm:$0xff] %v4837_v2  ;;  %221 = vst [vmem:[#allocation2 + $0xb0] sm:$0xff] %v4837_v2  ;;  %4232 = vmatpush3.bf16.msra.mxu0 %v4753_v6  ;;  %4041 = vmatprep.subr.bf16.mxu1 %v4754_v7  ;;  %v3646_v16 = vld [vmem:[%s4915_s14] sm:$0xff]   ;;  %v3789_v20 = vld [vmem:[%s4915_s14 + $0x8] sm:$0xff]   ;;  %v465_v24 = vshll.u32 %v4924_v17, 16 }
  0x11   : > { %222 = vst [vmem:[#allocation2 + $0xb8] sm:$0x3] %v4837_v2  ;;  %223 = vst [vmem:[#allocation2 + $0xc0] sm:$0xff] %v4837_v2  ;;  %4233 = vmatprep.subr.bf16.mxu0 %v4755_v8  ;;  %v3647_v18 = vunpack.c.l.bf16 %v3646_v16  ;;  %v3648_v19 = vunpack.c.h.bf16 %v3646_v16  ;;  %v3651_v21 = vunpack.c.l.bf16 %v3789_v20  ;;  %v3652_v22 = vunpack.c.h.bf16 %v3789_v20  ;;  %v3790_v25 = vld [vmem:[%s4915_s14 + $0x10] sm:$0xff]   ;;  %v3791_v30 = vld [vmem:[%s4915_s14 + $0x18] sm:$0xff]  }
  0x12   : > { %224 = vst [vmem:[#allocation2 + $0xc8] sm:$0xff] %v4837_v2  ;;  %225 = vst [vmem:[#allocation2 + $0xd0] sm:$0x3] %v4837_v2  ;;  %v467_v27 = vrot.slane %v465_v24, 1  ;;  %v3655_v28 = vunpack.c.l.bf16 %v3790_v25  ;;  %v3656_v29 = vunpack.c.h.bf16 %v3790_v25  ;;  %v3659_v31 = vunpack.c.l.bf16 %v3791_v30  ;;  %v3792_v35 = vld [vmem:[%s4915_s14 + $0x20] sm:$0xff]   ;;  %v3793_v39 = vld [vmem:[%s4915_s14 + $0x28] sm:$0xff]  }
  0x13   : > { %226 = vst [vmem:[#allocation2 + $0xd8] sm:$0xff] %v4837_v2  ;;  %227 = vst [vmem:[#allocation2 + $0xe0] sm:$0xff] %v4837_v2  ;;  %4042 = vmatpush3.bf16.msra.mxu1 %v4754_v7  ;;  %v3660_v32 = vunpack.c.h.bf16 %v3791_v30  ;;  %v3663_v37 = vunpack.c.l.bf16 %v3792_v35  ;;  %v3664_v38 = vunpack.c.h.bf16 %v3792_v35  ;;  %v3667_v43 = vunpack.c.l.bf16 %v3793_v39  ;;  %v3794_v57 = vld [vmem:[%s4915_s14 + $0x30] sm:$0xff]   ;;  %v4767_v16 = vld [vmem:[%s5657_s1 + $0x8] sm:$0xff]  }
  0x14   : > { %228 = vst [vmem:[#allocation2 + $0xe8] sm:$0x3] %v4837_v2  ;;  %229 = vst [vmem:[#allocation2 + $0xf0] sm:$0xff] %v4837_v2  ;;  %4234 = vmatpush3.bf16.msra.mxu0 %v4755_v8  ;;  %4043 = vmatprep.subr.bf16.mxu1 %v4756_v9  ;;  %v468_v34 = vsel %vm456_vm0, %v462_v13, %v467_v27  ;;  %v3668_v44 = vunpack.c.h.bf16 %v3793_v39  ;;  %v3671_v63 = vunpack.c.l.bf16 %v3794_v57  ;;  %v3672_v6 = vunpack.c.h.bf16 %v3794_v57  ;;  %v4766_v13 = vld [vmem:[%s5657_s1 + $0x148] sm:$0xff]   ;;  %v3796_v57 = vld [vmem:[%s4915_s14 + $0x40] sm:$0xff]  }
  0x15   : > { %230 = vst [vmem:[#allocation2 + $0xf8] sm:$0xff] %v4837_v2  ;;  %231 = vst [vmem:[#allocation2 + $0x100] sm:$0x3] %v4837_v2  ;;  %4235 = vmatprep.subr.bf16.mxu0 %v4757_v10  ;;  %4051 = vmatprep.mubr.bf16.mxu1 %v468_v34 }
  0x16   : > { %232 = vst [vmem:[#allocation2 + $0x108] sm:$0xff] %v4837_v2  ;;  %233 = vst [vmem:[#allocation2 + $0x110] sm:$0xff] %v4837_v2 }
  0x17   : > { %234 = vst [vmem:[#allocation2 + $0x118] sm:$0x3] %v4837_v2  ;;  %235 = vst [vmem:[#allocation2 + $0x120] sm:$0xff] %v4837_v2  ;;  %4044 = vmatpush3.bf16.msra.mxu1 %v4756_v9 }
  0x18   : > { %236 = vst [vmem:[#allocation2 + $0x128] sm:$0xff] %v4837_v2  ;;  %237 = vst [vmem:[#allocation2 + $0x130] sm:$0x3] %v4837_v2  ;;  %4236 = vmatpush3.bf16.msra.mxu0 %v4757_v10  ;;  %4045 = vmatprep.subr.bf16.mxu1 %v4758_v11 }
  0x19   : > { %238 = vst [vmem:[#allocation2 + $0x138] sm:$0xff] %v4837_v2  ;;  %239 = vst [vmem:[#allocation2 + $0x140] sm:$0xff] %v4837_v2  ;;  %4237 = vmatprep.subr.bf16.mxu0 %v4759_v14 }
  0x1a   : > { %240 = vst [vmem:[#allocation2 + $0x148] sm:$0x3] %v4837_v2  ;;  %241 = vst [vmem:[#allocation2 + $0x150] sm:$0xff] %v4837_v2 }
  0x1b   : > { %242 = vst [vmem:[#allocation2 + $0x158] sm:$0xff] %v4837_v2  ;;  %243 = vst [vmem:[#allocation2 + $0x160] sm:$0x3] %v4837_v2  ;;  %4046 = vmatpush3.bf16.msra.mxu1 %v4758_v11 }
  0x1c   : > { %244 = vst [vmem:[#allocation2 + $0x168] sm:$0xff] %v4837_v2  ;;  %245 = vst [vmem:[#allocation2 + $0x170] sm:$0xff] %v4837_v2  ;;  %4238 = vmatpush3.bf16.msra.mxu0 %v4759_v14  ;;  %4047 = vmatprep.subr.bf16.mxu1 %v4760_v23 }
  0x1d   : > { %246 = vst [vmem:[#allocation2 + $0x178] sm:$0x3] %v4837_v2  ;;  %247 = vst [vmem:[#allocation2 + $0x180] sm:$0xff] %v4837_v2  ;;  %4239 = vmatprep.subr.bf16.mxu0 %v4761_v26 }
  0x1e   : > { %248 = vst [vmem:[#allocation2 + $0x188] sm:$0xff] %v4837_v2  ;;  %249 = vst [vmem:[#allocation2 + $0x190] sm:$0x3] %v4837_v2 }
  0x1f   : > { %252 = vst [vmem:[#allocation2 + $0x1a8] sm:$0x3] %v4837_v2  ;;  %318 = vst [vmem:[#allocation2 + $0x19] sm:$0xff] %v3647_v18  ;;  %4048 = vmatpush3.bf16.msra.mxu1 %v4760_v23 }
  0x20   : > { %319 = vst [vmem:[#allocation2 + $0x21] sm:$0xff] %v3648_v19  ;;  %320 = vst [vmem:[#allocation2 + $0x31] sm:$0xff] %v3651_v21  ;;  %4240 = vmatpush3.bf16.msra.mxu0 %v4761_v26  ;;  %4049 = vmatprep.subr.bf16.mxu1 %v4762_v33  ;;  %v3795_v26 = vld [vmem:[%s4915_s14 + $0x38] sm:$0xff]  }
  0x21   : > { %321 = vst [vmem:[#allocation2 + $0x39] sm:$0xff] %v3652_v22  ;;  %322 = vst [vmem:[#allocation2 + $0x49] sm:$0xff] %v3655_v28  ;;  %4241 = vmatprep.subr.bf16.mxu0 %v4763_v36 }
  0x22   : > { %323 = vst [vmem:[#allocation2 + $0x51] sm:$0xff] %v3656_v29  ;;  %324 = vst [vmem:[#allocation2 + $0x61] sm:$0xff] %v3659_v31 }
  0x23   : > { %325 = vst [vmem:[#allocation2 + $0x69] sm:$0xff] %v3660_v32  ;;  %326 = vst [vmem:[#allocation2 + $0x79] sm:$0xff] %v3663_v37  ;;  %4050 = vmatpush3.bf16.msra.mxu1 %v4762_v33 }
  0x24   : > { %327 = vst [vmem:[#allocation2 + $0x81] sm:$0xff] %v3664_v38  ;;  %328 = vst [vmem:[#allocation2 + $0x91] sm:$0xff] %v3667_v43  ;;  %4242 = vmatpush3.bf16.msra.mxu0 %v4763_v36  ;;  %4083 = vmatprep.subr.bf16.mxu1 %v4764_v50 }
  0x25   : > { %329 = vst [vmem:[#allocation2 + $0x99] sm:$0xff] %v3668_v44  ;;  %330 = vst [vmem:[#allocation2 + $0xa9] sm:$0xff] %v3671_v63  ;;  %4275 = vmatprep.subr.bf16.mxu0 %v4765_v56 }
  0x26   : > { %v353_v40 = vld [vmem:[#allocation2 + $0x18] sm:$0xff]  ;;  %331 = vst [vmem:[#allocation2 + $0xb1] sm:$0xff] %v3672_v6  ;;  %v3679_v6 = vunpack.c.l.bf16 %v3796_v57 }
  0x27   : > { %v354_v41 = vld [vmem:[#allocation2 + $0x20] sm:$0xff]  ;;  %v355_v42 = vld [vmem:[#allocation2 + $0x28] sm:$0x3]  ;;  %v356_v47 = vld [vmem:[#allocation2 + $0x30] sm:$0xff] }
  0x28   : > { %v4945_v45 = vpack.c.bf16 %v354_v41, %v353_v40  ;;  %v4947_v46 = vpack.c.bf16 %v355_v42, %v355_v42  ;;  %v357_v48 = vld [vmem:[#allocation2 + $0x38] sm:$0xff]  ;;  %v358_v49 = vld [vmem:[#allocation2 + $0x40] sm:$0x3]  ;;  %v359_v61 = vld [vmem:[#allocation2 + $0x48] sm:$0xff]  ;;  %334 = vst [vmem:[#allocation2 + $0xd9] sm:$0xff] %v3679_v6 }
  0x29   : > { %v4952_v51 = vpack.c.bf16 %v357_v48, %v356_v47  ;;  %v4954_v52 = vpack.c.bf16 %v358_v49, %v358_v49  ;;  %v360_v62 = vld [vmem:[#allocation2 + $0x50] sm:$0xff]  ;;  %v361_v2 = vld [vmem:[#allocation2 + $0x58] sm:$0x3]  ;;  %v362_v4 = vld [vmem:[#allocation2 + $0x60] sm:$0xff] }
  0x2a   : > { %v470_v53 = vshrl.u32 %v4945_v45, 16  ;;  %v472_v54 = vshll.u32 %v4945_v45, 16  ;;  %v477_v55 = vshll.u32 %v4947_v46, 16  ;;  %v4966_v3 = vpack.c.bf16 %v360_v62, %v359_v61  ;;  %v363_v5 = vld [vmem:[#allocation2 + $0x68] sm:$0xff]  ;;  %v364_v10 = vld [vmem:[#allocation2 + $0x70] sm:$0x3] }
  0x2b   : > { %v482_v58 = vshrl.u32 %v4952_v51, 16  ;;  %v484_v59 = vshll.u32 %v4952_v51, 16  ;;  %v489_v60 = vshll.u32 %v4954_v52, 16  ;;  %v4968_v9 = vpack.c.bf16 %v361_v2, %v361_v2  ;;  %v365_v19 = vld [vmem:[#allocation2 + $0x78] sm:$0xff]  ;;  %v366_v20 = vld [vmem:[#allocation2 + $0x80] sm:$0xff]  ;;  %v368_v31 = vld [vmem:[#allocation2 + $0x90] sm:$0xff] }
  0x2c   : > { %v474_v0 = vrot.slane %v472_v54, 1  ;;  %v479_v1 = vrot.slane %v477_v55, 1  ;;  %v4970_v11 = vpack.c.bf16 %v363_v5, %v362_v4  ;;  %v494_v14 = vshrl.u32 %v4966_v3, 16  ;;  %v367_v21 = vld [vmem:[#allocation2 + $0x88] sm:$0x3]  ;;  %v369_v32 = vld [vmem:[#allocation2 + $0x98] sm:$0xff] }
  0x2d   : > { %v486_v7 = vrot.slane %v484_v59, 1  ;;  %v491_v8 = vrot.slane %v489_v60, 1  ;;  %v496_v15 = vshll.u32 %v4966_v3, 16  ;;  %v4980_v18 = vpack.c.bf16 %v364_v10, %v364_v10  ;;  %v370_v33 = vld [vmem:[#allocation2 + $0xa0] sm:$0x3]  ;;  %v4768_v40 = vld [vmem:[%s5657_s1 + $0x150] sm:$0xff]  }
  0x2e   : > { %v475_v12 = vor.u32 %v474_v0, %v470_v53  ;;  %v501_v23 = vshll.u32 %v4968_v9, 16  ;;  %v506_v24 = vshrl.u32 %v4970_v11, 16  ;;  %v508_v25 = vshll.u32 %v4970_v11, 16  ;;  %v4770_v47 = vld [vmem:[%s5657_s1 + $0x10] sm:$0xff]   ;;  %v371_v54 = vld [vmem:[#allocation2 + $0xa8] sm:$0xff] }
  0x2f   : > { %v487_v22 = vor.u32 %v486_v7, %v482_v58  ;;  %v498_v28 = vrot.slane %v496_v15, 1  ;;  %v513_v29 = vshll.u32 %v4980_v18, 16  ;;  %v4988_v30 = vpack.c.bf16 %v366_v20, %v365_v19  ;;  %v372_v60 = vld [vmem:[#allocation2 + $0xb0] sm:$0xff]  ;;  %v373_v61 = vld [vmem:[#allocation2 + $0xb8] sm:$0x3]  ;;  %v3797_v7 = vld [vmem:[%s4915_s14 + $0x48] sm:$0xff]  }
  0x30   : > { %v480_v27 = vsel %vm456_vm0, %v475_v12, %v479_v1  ;;  %v503_v35 = vrot.slane %v501_v23, 1  ;;  %v510_v36 = vrot.slane %v508_v25, 1  ;;  %v4993_v37 = vpack.c.bf16 %v367_v21, %v367_v21  ;;  %v3798_v19 = vld [vmem:[%s4915_s14 + $0x50] sm:$0xff]   ;;  %v4771_v20 = vld [vmem:[%s5657_s1 + $0x160] sm:$0xff]   ;;  %v3799_v23 = vld [vmem:[%s4915_s14 + $0x58] sm:$0xff]  }
  0x31   : > { %4243 = vmatprep.mubr.bf16.mxu0 %v480_v27  ;;  %4052 = vmatmul.mubr.bf16.vlgmr.msra.gmra.mrb[0].mxu1 %v480_v27  ;;  %v4991_v34 = vsel %vm456_vm0, %v487_v22, %v491_v8  ;;  %v499_v38 = vor.u32 %v498_v28, %v494_v14  ;;  %v515_v39 = vrot.slane %v513_v29, 1  ;;  %v518_v41 = vshrl.u32 %v4988_v30, 16  ;;  %v4769_v8 = vld [vmem:[%s5657_s1 + $0x158] sm:$0xff]   ;;  %v4776_v27 = vld [vmem:[%s5657_s1 + $0x20] sm:$0xff]  }
  0x32   : > { %4244 = vmatmul.mubr.bf16.vlgmr.msra.gmra.mrb[0].mxu0 %v4991_v34  ;;  %4084 = vmatpush3.bf16.msra.mxu1 %v4764_v50  ;;  %v520_v42 = vshll.u32 %v4988_v30, 16  ;;  %v511_v43 = vor.u32 %v510_v36, %v506_v24  ;;  %v525_v44 = vshll.u32 %v4993_v37, 16  ;;  %v5006_v48 = vpack.c.bf16 %v369_v32, %v368_v31  ;;  %v4773_v14 = vld [vmem:[%s5657_s1 + $0x18] sm:$0xff]   ;;  %v3800_v32 = vld [vmem:[%s4915_s14 + $0x60] sm:$0xff]  }
  0x33   : > { %4276 = vmatpush3.bf16.msra.mxu0 %v4765_v56  ;;  %4055 = vmatprep.mubr.bf16.mxu1 %v4991_v34  ;;  %v5008_v49 = vpack.c.bf16 %v370_v33, %v370_v33  ;;  %v5011_v50 = vsel %vm456_vm0, %v499_v38, %v503_v35  ;;  %v3675_v55 = vunpack.c.l.bf16 %v3795_v26  ;;  %v3676_v56 = vunpack.c.h.bf16 %v3795_v26 }
  0x34   : > { %4277 = vmatprep.subr.bf16.mxu0 %v4766_v13  ;;  %4085 = vmatprep.subr.bf16.mxu1 %v4767_v16  ;;  %v522_v53 = vrot.slane %v520_v42, 1  ;;  %v527_v58 = vrot.slane %v525_v44, 1  ;;  %v532_v59 = vshll.u32 %v5006_v48, 16  ;;  %v5017_v62 = vsel %vm456_vm0, %v511_v43, %v515_v39 }
  0x35   : > { %4247 = vmatprep.mubr.bf16.mxu0 %v5011_v50  ;;  %v5019_v0 = vpack.c.bf16 %v372_v60, %v371_v54  ;;  %v5021_v1 = vpack.c.bf16 %v373_v61, %v373_v61  ;;  %332 = vst [vmem:[#allocation2 + $0xc1] sm:$0xff] %v3675_v55  ;;  %333 = vst [vmem:[#allocation2 + $0xc9] sm:$0xff] %v3676_v56  ;;  %v530_v2 = vshrl.u32 %v5006_v48, 16  ;;  %v537_v5 = vshll.u32 %v5008_v49, 16 }
  0x36   : > { %4086 = vmatpush3.bf16.msra.mxu1 %v4767_v16  ;;  %v523_v63 = vor.u32 %v522_v53, %v518_v41  ;;  %v534_v4 = vrot.slane %v532_v59, 1  ;;  %v3680_v16 = vunpack.c.h.bf16 %v3796_v57  ;;  %v3683_v22 = vunpack.c.l.bf16 %v3797_v7  ;;  %v4772_v53 = vld [vmem:[%s5657_s1 + $0x168] sm:$0xff]   ;;  %v377_v57 = vld [vmem:[#allocation2 + $0xd8] sm:$0xff] }
  0x37   : > { %4278 = vmatpush3.bf16.msra.mxu0 %v4766_v13  ;;  %4087 = vmatprep.subr.bf16.mxu1 %v4770_v47  ;;  %v542_v12 = vshrl.u32 %v5019_v0, 16  ;;  %v544_v13 = vshll.u32 %v5019_v0, 16  ;;  %v549_v15 = vshll.u32 %v5021_v1, 16  ;;  %v539_v25 = vrot.slane %v537_v5, 1 }
  0x38   : > { %4279 = vmatprep.subr.bf16.mxu0 %v4768_v40  ;;  %v5030_v10 = vsel %vm456_vm0, %v523_v63, %v527_v58  ;;  %v535_v24 = vor.u32 %v534_v4, %v530_v2  ;;  %335 = vst [vmem:[#allocation2 + $0xe1] sm:$0xff] %v3680_v16  ;;  %v3684_v28 = vunpack.c.h.bf16 %v3797_v7  ;;  %336 = vst [vmem:[#allocation2 + $0xf1] sm:$0xff] %v3683_v22  ;;  %v3687_v31 = vunpack.c.l.bf16 %v3798_v19  ;;  %v4778_v58 = vld [vmem:[%s5657_s1 + $0x28] sm:$0xff]   ;;  %v3802_v63 = vld [vmem:[%s4915_s14 + $0x70] sm:$0xff]  }
  0x39   : > { %4056 = vmatmul.mubr.bf16.gmra.mrb[4].mxu1 %v5011_v50  ;;  %v546_v21 = vrot.slane %v544_v13, 1  ;;  %v551_v26 = vrot.slane %v549_v15, 1  ;;  %v3688_v38 = vunpack.c.h.bf16 %v3798_v19  ;;  %v3691_v39 = vunpack.c.l.bf16 %v3799_v23  ;;  %v4774_v4 = vld [vmem:[%s5657_s1 + $0x170] sm:$0xff]  }
  0x3a   : > { %4248 = vmatmul.mubr.bf16.gmra.mrb[4].mxu0 %v5017_v62  ;;  %4059 = vmatprep.mubr.bf16.mxu1 %v5017_v62  ;;  %337 = vst [vmem:[#allocation2 + $0xf9] sm:$0xff] %v3684_v28  ;;  %338 = vst [vmem:[#allocation2 + $0x109] sm:$0xff] %v3687_v31  ;;  %v5056_v42 = vsel %vm456_vm0, %v535_v24, %v539_v25  ;;  %v3692_v44 = vunpack.c.h.bf16 %v3799_v23  ;;  %v3695_v59 = vunpack.c.l.bf16 %v3800_v32  ;;  %v1136_v60 = vrot.slane %v4945_v45, 1 }
  0x3b   : > { %4280 = vmatpush3.bf16.msra.mxu0 %v4768_v40  ;;  %4251 = vmatprep.mubr.bf16.mxu0 %v5030_v10  ;;  %v547_v29 = vor.u32 %v546_v21, %v542_v12  ;;  %339 = vst [vmem:[#allocation2 + $0x111] sm:$0xff] %v3688_v38  ;;  %340 = vst [vmem:[#allocation2 + $0x121] sm:$0xff] %v3691_v39  ;;  %v3696_v61 = vunpack.c.h.bf16 %v3800_v32  ;;  %v1137_v5 = vrot.slane %v4947_v46, 1  ;;  %v3703_v22 = vunpack.c.l.bf16 %v3802_v63  ;;  %v4775_v38 = vld [vmem:[%s5657_s1 + $0x178] sm:$0xff]  }
  0x3c   : > { %4281 = vmatprep.subr.bf16.mxu0 %v4769_v8  ;;  %4088 = vmatpush3.bf16.msra.mxu1 %v4770_v47  ;;  %v374_v33 = vld [vmem:[#allocation2 + $0xc0] sm:$0xff]  ;;  %v375_v35 = vld [vmem:[#allocation2 + $0xc8] sm:$0xff]  ;;  %v376_v36 = vld [vmem:[#allocation2 + $0xd0] sm:$0x3]  ;;  %341 = vst [vmem:[#allocation2 + $0x129] sm:$0xff] %v3692_v44  ;;  %v3704_v23 = vunpack.c.h.bf16 %v3802_v63 }
  0x3d   : > { %4089 = vmatprep.subr.bf16.mxu1 %v4773_v14  ;;  %v5051_v40 = vpack.c.bf16 %v375_v35, %v374_v33  ;;  %v5053_v41 = vpack.c.bf16 %v376_v36, %v376_v36  ;;  %v5059_v43 = vsel %vm456_vm0, %v547_v29, %v551_v26  ;;  %v3801_v47 = vld [vmem:[%s4915_s14 + $0x68] sm:$0xff]   ;;  %342 = vst [vmem:[#allocation2 + $0x139] sm:$0xff] %v3695_v59  ;;  %343 = vst [vmem:[#allocation2 + $0x141] sm:$0xff] %v3696_v61  ;;  %v4780_v26 = vld [vmem:[%s5657_s1 + $0x30] sm:$0xff]  }
  0x3e   : > { %v3700_v12 = vunpack.c.h.bf16 %v3801_v47  ;;  %v5092_v28 = vsel %vm1132_vm1, %v1136_v60, %v1137_v5  ;;  %346 = vst [vmem:[#allocation2 + $0x169] sm:$0xff] %v3703_v22  ;;  %347 = vst [vmem:[#allocation2 + $0x171] sm:$0xff] %v3704_v23 }
  0x3f   : > { %4282 = vmatpush3.bf16.msra.mxu0 %v4769_v8  ;;  %v554_v54 = vshrl.u32 %v5051_v40, 16  ;;  %v556_v55 = vshll.u32 %v5051_v40, 16  ;;  %v561_v56 = vshll.u32 %v5053_v41, 16  ;;  %v378_v6 = vld [vmem:[#allocation2 + $0xe0] sm:$0xff]  ;;  %v379_v7 = vld [vmem:[#allocation2 + $0xe8] sm:$0x3]  ;;  %v3699_v8 = vunpack.c.l.bf16 %v3801_v47 }
  0x40   : > { %4283 = vmatprep.subr.bf16.mxu0 %v4771_v20  ;;  %4090 = vmatpush3.bf16.msra.mxu1 %v4773_v14  ;;  %v5081_v14 = vpack.c.bf16 %v378_v6, %v377_v57  ;;  %v5083_v15 = vpack.c.bf16 %v379_v7, %v379_v7  ;;  %v380_v16 = vld [vmem:[#allocation2 + $0xf0] sm:$0xff]  ;;  %345 = vst [vmem:[#allocation2 + $0x159] sm:$0xff] %v3700_v12 }
  0x41   : > { %4060 = vmatmul.mubr.bf16.gmra.mrb[8].mxu1 %v5030_v10  ;;  %4091 = vmatprep.subr.bf16.mxu1 %v4776_v27  ;;  %v558_v2 = vrot.slane %v556_v55, 1  ;;  %v563_v13 = vrot.slane %v561_v56, 1  ;;  %v381_v21 = vld [vmem:[#allocation2 + $0xf8] sm:$0xff]  ;;  %v382_v46 = vld [vmem:[#allocation2 + $0x100] sm:$0x3]  ;;  %344 = vst [vmem:[#allocation2 + $0x151] sm:$0xff] %v3699_v8 }
  0x42   : > { %4252 = vmatmul.mubr.bf16.gmra.mrb[8].mxu0 %v5056_v42  ;;  %4063 = vmatprep.mubr.bf16.mxu1 %v5056_v42  ;;  %v5086_v24 = vpack.c.bf16 %v381_v21, %v380_v16  ;;  %v383_v25 = vld [vmem:[#allocation2 + $0x108] sm:$0xff]  ;;  %v573_v29 = vshll.u32 %v5083_v15, 16  ;;  %v5096_v31 = vpack.c.bf16 %v382_v46, %v382_v46  ;;  %v384_v32 = vld [vmem:[#allocation2 + $0x110] sm:$0xff]  ;;  %v385_v33 = vld [vmem:[#allocation2 + $0x118] sm:$0x3]  ;;  %v1140_v55 = vrot.slane %v4954_v52, 1 }
  0x43   : > { %4284 = vmatpush3.bf16.msra.mxu0 %v4771_v20  ;;  %4255 = vmatprep.mubr.bf16.mxu0 %v5059_v43  ;;  %v559_v19 = vor.u32 %v558_v2, %v554_v54  ;;  %v568_v20 = vshll.u32 %v5081_v14, 16  ;;  %v386_v35 = vld [vmem:[#allocation2 + $0x120] sm:$0xff]  ;;  %v1139_v54 = vrot.slane %v4952_v51, 1  ;;  %v387_v57 = vld [vmem:[#allocation2 + $0x128] sm:$0xff]  ;;  %v388_v59 = vld [vmem:[#allocation2 + $0x130] sm:$0x3]  ;;  %v5112_v61 = vpack.c.bf16 %v385_v33, %v385_v33 }
  0x44   : > { %4285 = vmatprep.subr.bf16.mxu0 %v4772_v53  ;;  %4092 = vmatpush3.bf16.msra.mxu1 %v4776_v27  ;;  %v566_v27 = vshrl.u32 %v5081_v14, 16  ;;  %v578_v44 = vshrl.u32 %v5086_v24, 16  ;;  %v580_v47 = vshll.u32 %v5086_v24, 16  ;;  %v585_v56 = vshll.u32 %v5096_v31, 16  ;;  %v4782_v2 = vld [vmem:[%s5657_s1 + $0x38] sm:$0xff]   ;;  %v390_v16 = vld [vmem:[#allocation2 + $0x140] sm:$0xff] }
  0x45   : > { %4093 = vmatprep.subr.bf16.mxu1 %v4778_v58  ;;  %v5099_v36 = vsel %vm456_vm0, %v559_v19, %v563_v13  ;;  %v570_v39 = vrot.slane %v568_v20, 1  ;;  %v5114_v63 = vpack.c.bf16 %v387_v57, %v386_v35  ;;  %v5123_v8 = vpack.c.bf16 %v388_v59, %v388_v59  ;;  %v389_v13 = vld [vmem:[#allocation2 + $0x138] sm:$0xff]  ;;  %v4777_v19 = vld [vmem:[%s5657_s1 + $0x180] sm:$0xff]   ;;  %v391_v33 = vld [vmem:[#allocation2 + $0x148] sm:$0x3] }
  0x46   : > { %v582_v60 = vrot.slane %v580_v47, 1  ;;  %v587_v7 = vrot.slane %v585_v56, 1  ;;  %v1142_v21 = vrot.slane %v4966_v3, 1  ;;  %v1143_v46 = vrot.slane %v4968_v9, 1 }
  0x47   : > { %4286 = vmatpush3.bf16.msra.mxu0 %v4772_v53  ;;  %v5109_v53 = vpack.c.bf16 %v384_v32, %v383_v25  ;;  %v571_v52 = vor.u32 %v570_v39, %v566_v27  ;;  %v604_v12 = vshll.u32 %v5114_v63, 16  ;;  %v5132_v23 = vsel %vm1132_vm1, %v1139_v54, %v1140_v55  ;;  %v5139_v27 = vld [vmem:[%s5657_s1 + $0x80] sm:$0xff]  }
  0x48   : > { %4287 = vmatprep.subr.bf16.mxu0 %v4774_v4  ;;  %4094 = vmatpush3.bf16.msra.mxu1 %v4778_v58  ;;  %v575_v58 = vrot.slane %v573_v29, 1  ;;  %v583_v6 = vor.u32 %v582_v60, %v578_v44  ;;  %v393_v22 = vld [vmem:[#allocation2 + $0x158] sm:$0xff]  ;;  %v597_v25 = vshll.u32 %v5112_v61, 16  ;;  %v602_v32 = vshrl.u32 %v5114_v63, 16  ;;  %v394_v56 = vld [vmem:[#allocation2 + $0x160] sm:$0x3] }
  0x49   : > { %4064 = vmatmul.mubr.bf16.gmra.mrb[12].mxu1 %v5059_v43  ;;  %4095 = vmatprep.subr.bf16.mxu1 %v4780_v26  ;;  %v592_v5 = vshll.u32 %v5109_v53, 16  ;;  %v590_v20 = vshrl.u32 %v5109_v53, 16  ;;  %v5148_v35 = vpack.c.bf16 %v390_v16, %v389_v13  ;;  %v606_v44 = vrot.slane %v604_v12, 1 }
  0x4a   : > { %4256 = vmatmul.mubr.bf16.gmra.mrb[12].mxu0 %v5099_v36  ;;  %4067 = vmatprep.mubr.bf16.mxu1 %v5099_v36  ;;  %v5142_v29 = vsel %vm456_vm0, %v571_v52, %v575_v58  ;;  %v5151_v39 = vsel %vm456_vm0, %v583_v6, %v587_v7  ;;  %v609_v47 = vshll.u32 %v5123_v8, 16  ;;  %v5157_v55 = vsel %vm1132_vm1, %v1142_v21, %v1143_v46  ;;  %v397_v46 = vld [vmem:[#allocation2 + $0x178] sm:$0x3] }
  0x4b   : > { %4288 = vmatpush3.bf16.msra.mxu0 %v4774_v4  ;;  %4291 = vmatprep.mubr.bf16.mxu0 %v5092_v28  ;;  %v392_v4 = vld [vmem:[#allocation2 + $0x150] sm:$0xff]  ;;  %v594_v9 = vrot.slane %v592_v5, 1  ;;  %v1145_v57 = vrot.slane %v4970_v11, 1  ;;  %v5162_v59 = vpack.c.bf16 %v391_v33, %v391_v33  ;;  %v599_v52 = vrot.slane %v597_v25, 1  ;;  %v395_v5 = vld [vmem:[#allocation2 + $0x168] sm:$0xff] }
  0x4c   : > { %4289 = vmatprep.subr.bf16.mxu0 %v4775_v38  ;;  %4096 = vmatpush3.bf16.msra.mxu1 %v4780_v26  ;;  %v4779_v26 = vld [vmem:[%s5657_s1 + $0x188] sm:$0xff]   ;;  %v5154_v54 = vpack.c.bf16 %v393_v22, %v392_v4  ;;  %v616_v58 = vshll.u32 %v5148_v35, 16  ;;  %v607_v6 = vor.u32 %v606_v44, %v602_v32  ;;  %v611_v7 = vrot.slane %v609_v47, 1  ;;  %v3803_v47 = vld [vmem:[%s4915_s14 + $0x78] sm:$0xff]   ;;  %s5574_s14 = scalar_lea.vmem %s5660_s4, %s3611_s7 }
  0x4d   : > { %4097 = vmatprep.subr.bf16.mxu1 %v4782_v2  ;;  %v595_v60 = vor.u32 %v594_v9, %v590_v20  ;;  %v5172_v12 = vpack.c.bf16 %v394_v56, %v394_v56  ;;  %v1148_v16 = vrot.slane %v4988_v30, 1  ;;  %v1149_v21 = vrot.slane %v4993_v37, 1 }
  0x4e   : > { %v628_v13 = vshll.u32 %v5154_v54, 16  ;;  %v614_v25 = vshrl.u32 %v5148_v35, 16  ;;  %v618_v9 = vrot.slane %v616_v58, 1  ;;  %v5188_v32 = vsel %vm456_vm0, %v607_v6, %v611_v7 }
  0x4f   : > { %4290 = vmatpush3.bf16.msra.mxu0 %v4775_v38  ;;  %v1146_v38 = vrot.slane %v4980_v18, 1  ;;  %v4781_v18 = vld [vmem:[%s5657_s1 + $0x190] sm:$0xff]   ;;  %v5181_v22 = vsel %vm456_vm0, %v595_v60, %v599_v52  ;;  %v626_v37 = vshrl.u32 %v5154_v54, 16  ;;  %v633_v44 = vshll.u32 %v5172_v12, 16 }
  0x50   : > { %4323 = vmatprep.subr.bf16.mxu0 %v4777_v19  ;;  %4098 = vmatpush3.bf16.msra.mxu1 %v4782_v2  ;;  %v396_v2 = vld [vmem:[#allocation2 + $0x170] sm:$0xff]  ;;  %v630_v33 = vrot.slane %v628_v13, 1  ;;  %v5194_v56 = vsel %vm1132_vm1, %v1148_v16, %v1149_v21  ;;  %v1152_v60 = vrot.slane %v5008_v49, 1  ;;  %v619_v58 = vor.u32 %v618_v9, %v614_v25  ;;  %v4785_v21 = vld [vmem:[%s5657_s1 + $0x1a0] sm:$0xff]  }
  0x51   : > { %4068 = vmatmul.mubr.bf16.gmra.mrb[16].mxu1 %v5142_v29  ;;  %4131 = vmatprep.subr.bf16.mxu1 %v5139_v27  ;;  %v5178_v4 = vpack.c.bf16 %v396_v2, %v395_v5  ;;  %v5184_v20 = vsel %vm1132_vm1, %v1145_v57, %v1146_v38  ;;  %v4783_v57 = vld [vmem:[%s5657_s1 + $0x198] sm:$0xff]   ;;  %v1151_v38 = vrot.slane %v5006_v48, 1  ;;  %v5205_v5 = vpack.c.bf16 %v397_v46, %v397_v46 }
  0x52   : > { %4292 = vmatmul.mubr.bf16.vlgmr.msra.gmra.mrb[0].mxu0 %v5132_v23  ;;  %4071 = vmatprep.mubr.bf16.mxu1 %v5151_v39  ;;  %v3707_v2 = vunpack.c.l.bf16 %v3803_v47  ;;  %v3708_v6 = vunpack.c.h.bf16 %v3803_v47  ;;  %v631_v7 = vor.u32 %v630_v33, %v626_v37  ;;  %v635_v13 = vrot.slane %v633_v44, 1  ;;  %v4787_v33 = vld [vmem:[%s5657_s1 + $0x1a8] sm:$0xff]  }
  0x53   : > { %4324 = vmatpush3.bf16.msra.mxu0 %v4777_v19  ;;  %4295 = vmatprep.mubr.bf16.mxu0 %v5157_v55  ;;  %v621_v19 = vshll.u32 %v5162_v59, 16  ;;  %v640_v52 = vshll.u32 %v5178_v4, 16  ;;  %v1154_v16 = vrot.slane %v5019_v0, 1  ;;  %v1155_v49 = vrot.slane %v5021_v1, 1 }
  0x54   : > { %4325 = vmatprep.subr.bf16.mxu0 %v4779_v26  ;;  %348 = vst [vmem:[#allocation2 + $0x181] sm:$0xff] %v3707_v2  ;;  %349 = vst [vmem:[#allocation2 + $0x189] sm:$0xff] %v3708_v6  ;;  %v5219_v9 = vsel %vm1132_vm1, %v1151_v38, %v1152_v60  ;;  %v5222_v1 = vsel %vm456_vm0, %v631_v7, %v635_v13  ;;  %v4789_v38 = vld [vmem:[%s5657_s1 + $0x1b0] sm:$0xff]   ;;  %v1160_v60 = vrot.slane %v5081_v14, 1  ;;  %v1163_v7 = vrot.slane %v5086_v24, 1 }
  0x55   : > { %v642_v25 = vrot.slane %v640_v52, 1  ;;  %v5225_v37 = vsel %vm1132_vm1, %v1154_v16, %v1155_v49  ;;  %v1161_v52 = vrot.slane %v5083_v15, 1  ;;  %v4839_v15 = vmov 0.0|0.0  }
  0x56   : > { %v1164_v13 = vrot.slane %v5096_v31, 1  ;;  %v1166_v16 = vrot.slane %v5109_v53, 1  ;;  %v1167_v49 = vrot.slane %v5112_v61, 1  ;;  %v1169_v61 = vrot.slane %v5114_v63, 1 }
  0x57   : > { %4326 = vmatpush3.bf16.msra.mxu0 %v4779_v26  ;;  %v623_v26 = vrot.slane %v621_v19, 1  ;;  %v638_v19 = vshrl.u32 %v5178_v4, 16  ;;  %v5248_v6 = vsel %vm1132_vm1, %v1160_v60, %v1161_v52  ;;  %v1178_v60 = vrot.slane %v5178_v4, 1 }
  0x58   : > { %4327 = vmatprep.subr.bf16.mxu0 %v4781_v18  ;;  %v5273_v31 = vsel %vm1132_vm1, %v1166_v16, %v1167_v49  ;;  %v1179_v52 = vrot.slane %v5205_v5, 1 }
  0x59   : > { %4072 = vmatmul.mubr.bf16.gmra.mrb[20].mxu1 %v5181_v22  ;;  %v5215_v46 = vsel %vm456_vm0, %v619_v58, %v623_v26  ;;  %v643_v44 = vor.u32 %v642_v25, %v638_v19  ;;  %v1158_v26 = vrot.slane %v5053_v41, 1  ;;  %v4791_v41 = vld [vmem:[%s5657_s1 + $0x1b8] sm:$0xff]   ;;  %v5267_v19 = vsel %vm1132_vm1, %v1163_v7, %v1164_v13  ;;  %v4786_v25 = vld [vmem:[%s5657_s1 + $0x88] sm:$0xff]  }
  0x5a   : > { %4296 = vmatmul.mubr.bf16.gmra.mrb[4].mxu0 %v5184_v20  ;;  %4075 = vmatprep.mubr.bf16.mxu1 %v5188_v32 }
  0x5b   : > { %4299 = vmatprep.mubr.bf16.mxu0 %v5194_v56  ;;  %4328 = vmatpush3.bf16.msra.mxu0 %v4781_v18  ;;  %v645_v18 = vshll.u32 %v5205_v5, 16  ;;  %v399_v7 = vld [vmem:[#allocation2 + $0x188] sm:$0xff]  ;;  %v400_v13 = vld [vmem:[#allocation2 + $0x190] sm:$0x3] }
  0x5c   : > { %4329 = vmatprep.subr.bf16.mxu0 %v4783_v57  ;;  %v4794_v5 = vld [vmem:[%s5657_s1 + $0xa8] sm:$0xff]  }
  0x5d   : > { %v647_v47 = vrot.slane %v645_v18, 1  ;;  %v1170_v18 = vrot.slane %v5123_v8, 1  ;;  %v4790_v8 = vld [vmem:[%s5657_s1 + $0x98] sm:$0xff]  }
  0x5f   : > { %4330 = vmatpush3.bf16.msra.mxu0 %v4783_v57  ;;  %v1157_v57 = vrot.slane %v5051_v40, 1  ;;  %v5242_v58 = vsel %vm456_vm0, %v643_v44, %v647_v47  ;;  %v1172_v44 = vrot.slane %v5148_v35, 1  ;;  %v1173_v47 = vrot.slane %v5162_v59, 1 }
  0x60   : > { %4331 = vmatprep.subr.bf16.mxu0 %v4785_v21  ;;  %v1175_v59 = vrot.slane %v5154_v54, 1 }
  0x61   : > { %4076 = vmatmul.mubr.bf16.gmra.mrb[24].mxu1 %v5215_v46  ;;  %v5245_v2 = vsel %vm1132_vm1, %v1157_v57, %v1158_v26  ;;  %v5292_v57 = vsel %vm1132_vm1, %v1172_v44, %v1173_v47  ;;  %v1176_v26 = vrot.slane %v5172_v12, 1  ;;  %v5316_v12 = vsel %vm1132_vm1, %v1178_v60, %v1179_v52  ;;  %v4798_v47 = vld [vmem:[%s5657_s1 + $0xb8] sm:$0xff]   ;;  %v4803_v60 = vld [vmem:[%s5657_s1 + $0x1e8] sm:$0xff]  }
  0x62   : > { %4300 = vmatmul.mubr.bf16.gmra.mrb[8].mxu0 %v5219_v9  ;;  %4079 = vmatprep.mubr.bf16.mxu1 %v5222_v1  ;;  %v1133_v52 = vrot.slane %v4839_v15, 1 }
  0x63   : > { %4303 = vmatprep.mubr.bf16.mxu0 %v5225_v37  ;;  %4332 = vmatpush3.bf16.msra.mxu0 %v4785_v21  ;;  %v5264_v21 = vld [vmem:[%s5657_s1 + $0x1c0] sm:$0xff]   ;;  %v5309_v16 = vsel %vm1132_vm1, %v1175_v59, %v1176_v26  ;;  %v4795_v59 = vld [vmem:[%s5657_s1 + $0x1c8] sm:$0xff]   ;;  %v4797_v26 = vld [vmem:[%s5657_s1 + $0x1d0] sm:$0xff]  }
  0x64   : > { %4333 = vmatprep.subr.bf16.mxu0 %v4787_v33 }
  0x67   : > { %4334 = vmatpush3.bf16.msra.mxu0 %v4787_v33  ;;  %v4788_v33 = vld [vmem:[%s5657_s1 + $0x90] sm:$0xff]  }
  0x68   : > { %4335 = vmatprep.subr.bf16.mxu0 %v4789_v38 }
  0x69   : > { %4080 = vmatmul.mubr.bf16.gmra.mrb[28].mxu1 %v5242_v58 }
  0x6a   : > { %4304 = vmatmul.mubr.bf16.gmra.mrb[12].mxu0 %v5245_v2  ;;  %4099 = vmatprep.mubr.bf16.mxu1 %v4839_v15  ;;  %v4802_v15 = vld [vmem:[%s5657_s1 + $0xc8] sm:$0xff]  }
  0x6b   : > { %4307 = vmatprep.mubr.bf16.mxu0 %v5248_v6  ;;  %4336 = vmatpush3.bf16.msra.mxu0 %v4789_v38  ;;  %v4792_v38 = vld [vmem:[%s5657_s1 + $0xa0] sm:$0xff]  }
  0x6c   : > { %4337 = vmatprep.subr.bf16.mxu0 %v4791_v41 }
  0x6f   : > { %4338 = vmatpush3.bf16.msra.mxu0 %v4791_v41  ;;  %v398_v41 = vld [vmem:[#allocation2 + $0x180] sm:$0xff] }
  0x70   : > { %4371 = vmatprep.subr.bf16.mxu0 %v5264_v21  ;;  %v5311_v49 = vpack.c.bf16 %v399_v7, %v398_v41  ;;  %v1134_v41 = vrot.slane %v4924_v17, 1  ;;  %v4805_v7 = vld [vmem:[%s5657_s1 + $0x1f0] sm:$0xff]   ;;  %v4809_v17 = vld [vmem:[%s5657_s1 + $0x200] sm:$0xff]  }
  0x71   : > { %4100 = vmatmul.mubr.bf16.vlgmr.msra.gmra.mrb[0].mxu1 %v4945_v45 }
  0x72   : > { %4308 = vmatmul.mubr.bf16.gmra.mrb[16].mxu0 %v5267_v19  ;;  %4132 = vmatpush3.bf16.msra.mxu1 %v5139_v27  ;;  %v5289_v27 = vsel %vm1132_vm1, %v1169_v61, %v1170_v18  ;;  %v1986_v61 = vrot.slane %v5311_v49, 1 }
  0x73   : > { %4103 = vmatprep.mubr.bf16.mxu1 %v4952_v51  ;;  %4311 = vmatprep.mubr.bf16.mxu0 %v5273_v31 }
  0x74   : > { %4133 = vmatprep.subr.bf16.mxu1 %v4786_v25 }
  0x76   : > { %4134 = vmatpush3.bf16.msra.mxu1 %v4786_v25  ;;  %v5313_v25 = vpack.c.bf16 %v400_v13, %v400_v13  ;;  %v1135_v13 = vsel %vm1132_vm1, %v1133_v52, %v1134_v41  ;;  %v403_v41 = vld [vmem:[#allocation2 + $0x1a8] sm:$0x3] }
  0x77   : > { %4135 = vmatprep.subr.bf16.mxu1 %v4788_v33 }
  0x78   : > { %v1987_v18 = vrot.slane %v5313_v25, 1 }
  0x79   : > { %4104 = vmatmul.mubr.bf16.gmra.mrb[4].mxu1 %v4966_v3 }
  0x7a   : > { %4312 = vmatmul.mubr.bf16.gmra.mrb[20].mxu0 %v5289_v27  ;;  %4107 = vmatprep.mubr.bf16.mxu1 %v4970_v11  ;;  %v5331_v44 = vsel %vm1132_vm1, %v1986_v61, %v1987_v18  ;;  %v4804_v61 = vld [vmem:[%s5657_s1 + $0xd0] sm:$0xff]   ;;  %v4806_v18 = vld [vmem:[%s5657_s1 + $0xd8] sm:$0xff]  }
  0x7b   : > { %4315 = vmatprep.mubr.bf16.mxu0 %v5292_v57  ;;  %4136 = vmatpush3.bf16.msra.mxu1 %v4788_v33  ;;  %v4796_v33 = vld [vmem:[%s5657_s1 + $0xb0] sm:$0xff]  }
  0x7c   : > { %4137 = vmatprep.subr.bf16.mxu1 %v4790_v8 }
  0x7f   : > { %4138 = vmatpush3.bf16.msra.mxu1 %v4790_v8  ;;  %v4800_v8 = vld [vmem:[%s5657_s1 + $0xc0] sm:$0xff]  }
  0x80   : > { %4139 = vmatprep.subr.bf16.mxu1 %v4792_v38 }
  0x81   : > { %4108 = vmatmul.mubr.bf16.gmra.mrb[8].mxu1 %v4988_v30 }
  0x82   : > { %4316 = vmatmul.mubr.bf16.gmra.mrb[24].mxu0 %v5309_v16  ;;  %4111 = vmatprep.mubr.bf16.mxu1 %v5006_v48 }
  0x83   : > { %4319 = vmatprep.mubr.bf16.mxu0 %v5316_v12  ;;  %4140 = vmatpush3.bf16.msra.mxu1 %v4792_v38  ;;  %v4799_v38 = vld [vmem:[%s5657_s1 + $0x1d8] sm:$0xff]  }
  0x84   : > { %4141 = vmatprep.subr.bf16.mxu1 %v4794_v5 }
  0x87   : > { %4142 = vmatpush3.bf16.msra.mxu1 %v4794_v5  ;;  %v4807_v5 = vld [vmem:[%s5657_s1 + $0x1f8] sm:$0xff]  }
  0x88   : > { %4143 = vmatprep.subr.bf16.mxu1 %v4796_v33 }
  0x89   : > { %4112 = vmatmul.mubr.bf16.gmra.mrb[12].mxu1 %v5019_v0 }
  0x8a   : > { %4320 = vmatmul.mubr.bf16.gmra.mrb[28].mxu0 %v5331_v44  ;;  %4115 = vmatprep.mubr.bf16.mxu1 %v5051_v40 }
  0x8b   : > { %4339 = vmatprep.mubr.bf16.mxu0 %v4952_v51  ;;  %4144 = vmatpush3.bf16.msra.mxu1 %v4796_v33  ;;  %v4810_v33 = vld [vmem:[%s5657_s1 + $0xe8] sm:$0xff]  }
  0x8c   : > { %4145 = vmatprep.subr.bf16.mxu1 %v4798_v47 }
  0x8f   : > { %4146 = vmatpush3.bf16.msra.mxu1 %v4798_v47  ;;  %v4812_v47 = vld [vmem:[%s5657_s1 + $0xf0] sm:$0xff]  }
  0x90   : > { %4179 = vmatprep.subr.bf16.mxu1 %v4800_v8 }
  0x91   : > { %4116 = vmatmul.mubr.bf16.gmra.mrb[16].mxu1 %v5081_v14 }
  0x92   : > { %4340 = vmatmul.mubr.bf16.vlgmr.msra.gmra.mrb[0].mxu0 %v4966_v3  ;;  %4119 = vmatprep.mubr.bf16.mxu1 %v5086_v24 }
  0x93   : > { %4372 = vmatpush3.bf16.msra.mxu0 %v5264_v21  ;;  %4343 = vmatprep.mubr.bf16.mxu0 %v4970_v11  ;;  %v4801_v21 = vld [vmem:[%s5657_s1 + $0x1e0] sm:$0xff]  }
  0x94   : > { %4373 = vmatprep.subr.bf16.mxu0 %v4795_v59 }
  0x97   : > { %4374 = vmatpush3.bf16.msra.mxu0 %v4795_v59 }
  0x98   : > { %4375 = vmatprep.subr.bf16.mxu0 %v4797_v26 }
  0x99   : > { %4120 = vmatmul.mubr.bf16.gmra.mrb[20].mxu1 %v5109_v53 }
  0x9a   : > { %4344 = vmatmul.mubr.bf16.gmra.mrb[4].mxu0 %v4988_v30  ;;  %4123 = vmatprep.mubr.bf16.mxu1 %v5114_v63 }
  0x9b   : > { %4347 = vmatprep.mubr.bf16.mxu0 %v5006_v48  ;;  %4376 = vmatpush3.bf16.msra.mxu0 %v4797_v26  ;;  %v4814_v26 = vld [vmem:[%s5657_s1 + $0xf8] sm:$0xff]  }
  0x9c   : > { %4377 = vmatprep.subr.bf16.mxu0 %v4799_v38 }
  0x9f   : > { %4378 = vmatpush3.bf16.msra.mxu0 %v4799_v38  ;;  %v4811_v38 = vld [vmem:[%s5657_s1 + $0x208] sm:$0xff]  }
  0xa0   : > { %4379 = vmatprep.subr.bf16.mxu0 %v4801_v21 }
  0xa1   : > { %4124 = vmatmul.mubr.bf16.gmra.mrb[24].mxu1 %v5148_v35 }
  0xa2   : > { %4348 = vmatmul.mubr.bf16.gmra.mrb[8].mxu0 %v5019_v0  ;;  %4127 = vmatprep.mubr.bf16.mxu1 %v5154_v54 }
  0xa3   : > { %4351 = vmatprep.mubr.bf16.mxu0 %v5051_v40  ;;  %4380 = vmatpush3.bf16.msra.mxu0 %v4801_v21  ;;  %v4821_v21 = vld [vmem:[%s5657_s1 + $0x100] sm:$0xff]  }
  0xa4   : > { %4381 = vmatprep.subr.bf16.mxu0 %v4803_v60 }
  0xa7   : > { %4382 = vmatpush3.bf16.msra.mxu0 %v4803_v60  ;;  %v4815_v60 = vld [vmem:[%s5657_s1 + $0x218] sm:$0xff]  }
  0xa8   : > { %4383 = vmatprep.subr.bf16.mxu0 %v4805_v7 }
  0xa9   : > { %4128 = vmatmul.mubr.bf16.gmra.mrb[28].mxu1 %v5178_v4 }
  0xaa   : > { %4352 = vmatmul.mubr.bf16.gmra.mrb[12].mxu0 %v5081_v14  ;;  %4147 = vmatprep.mubr.bf16.mxu1 %v1135_v13 }
  0xab   : > { %4355 = vmatprep.mubr.bf16.mxu0 %v5086_v24  ;;  %4384 = vmatpush3.bf16.msra.mxu0 %v4805_v7  ;;  %v5482_v7 = vpack.c.bf16 %v403_v41, %v403_v41 }
  0xac   : > { %4385 = vmatprep.subr.bf16.mxu0 %v4807_v5 }
  0xaf   : > { %4386 = vmatpush3.bf16.msra.mxu0 %v4807_v5 }
  0xb0   : > { %4419 = vmatprep.subr.bf16.mxu0 %v4809_v17 }
  0xb1   : > { %4148 = vmatmul.mubr.bf16.vlgmr.msra.gmra.mrb[0].mxu1 %v5092_v28  ;;  %v4808_v28 = vld [vmem:[%s5657_s1 + $0xe0] sm:$0xff]  }
  0xb2   : > { %4356 = vmatmul.mubr.bf16.gmra.mrb[16].mxu0 %v5109_v53  ;;  %4180 = vmatpush3.bf16.msra.mxu1 %v4800_v8  ;;  %v4820_v8 = vld [vmem:[#allocation2] sm:$0xff] }
  0xb3   : > { %4151 = vmatprep.mubr.bf16.mxu1 %v5132_v23  ;;  %4359 = vmatprep.mubr.bf16.mxu0 %v5114_v63  ;;  %v5416_v59 = vpack.c.bf16 %v4820_v8, %v4820_v8 }
  0xb4   : > { %4181 = vmatprep.subr.bf16.mxu1 %v4802_v15 }
  0xb5   : > { %v2509_v13 = vshll.u32 %v5416_v59, 16 }
  0xb6   : > { %4182 = vmatpush3.bf16.msra.mxu1 %v4802_v15 }
  0xb7   : > { %4183 = vmatprep.subr.bf16.mxu1 %v4804_v61  ;;  %v2511_v15 = vrot.slane %v2509_v13, 1 }
  0xb9   : > { %4152 = vmatmul.mubr.bf16.gmra.mrb[4].mxu1 %v5157_v55 }
  0xba   : > { %4360 = vmatmul.mubr.bf16.gmra.mrb[20].mxu0 %v5148_v35  ;;  %4155 = vmatprep.mubr.bf16.mxu1 %v5184_v20 }
  0xbb   : > { %4363 = vmatprep.mubr.bf16.mxu0 %v5154_v54  ;;  %4184 = vmatpush3.bf16.msra.mxu1 %v4804_v61  ;;  %v2514_v61 = vshll.u32 %v5482_v7, 16 }
  0xbc   : > { %4185 = vmatprep.subr.bf16.mxu1 %v4806_v18 }
  0xbf   : > { %4186 = vmatpush3.bf16.msra.mxu1 %v4806_v18  ;;  %v4825_v18 = vld [vmem:[%s5657_s1 + $0x120] sm:$0xff]  }
  0xc0   : > { %4187 = vmatprep.subr.bf16.mxu1 %v4808_v28 }
  0xc1   : > { %4156 = vmatmul.mubr.bf16.gmra.mrb[8].mxu1 %v5194_v56 }
  0xc2   : > { %4364 = vmatmul.mubr.bf16.gmra.mrb[24].mxu0 %v5178_v4  ;;  %4159 = vmatprep.mubr.bf16.mxu1 %v5219_v9 }
  0xc3   : > { %4367 = vmatprep.mubr.bf16.mxu0 %v5311_v49  ;;  %4188 = vmatpush3.bf16.msra.mxu1 %v4808_v28 }
  0xc4   : > { %4189 = vmatprep.subr.bf16.mxu1 %v4810_v33 }
  0xc7   : > { %4190 = vmatpush3.bf16.msra.mxu1 %v4810_v33  ;;  %v2516_v33 = vrot.slane %v2514_v61, 1 }
  0xc8   : > { %4191 = vmatprep.subr.bf16.mxu1 %v4812_v47 }
  0xc9   : > { %4160 = vmatmul.mubr.bf16.gmra.mrb[12].mxu1 %v5225_v37 }
  0xca   : > { %4368 = vmatmul.mubr.bf16.gmra.mrb[28].mxu0 %v5416_v59  ;;  %4163 = vmatprep.mubr.bf16.mxu1 %v5245_v2 }
  0xcb   : > { %4387 = vmatprep.mubr.bf16.mxu0 %v4991_v34  ;;  %4192 = vmatpush3.bf16.msra.mxu1 %v4812_v47  ;;  %v4813_v34 = vld [vmem:[%s5657_s1 + $0x210] sm:$0xff]   ;;  %v4826_v47 = vld [vmem:[%s5657_s1 + $0x128] sm:$0xff]  }
  0xcc   : > { %4193 = vmatprep.subr.bf16.mxu1 %v4814_v26 }
  0xcf   : > { %4194 = vmatpush3.bf16.msra.mxu1 %v4814_v26 }
  0xd0   : > { %4467 = vmatprep.subr.bf16.mxu1 %v4821_v21 }
  0xd1   : > { %4164 = vmatmul.mubr.bf16.gmra.mrb[16].mxu1 %v5248_v6 }
  0xd2   : > { %4388 = vmatmul.mubr.bf16.vlgmr.msra.gmra.mrb[0].mxu0 %v5011_v50  ;;  %4167 = vmatprep.mubr.bf16.mxu1 %v5267_v19  ;;  %v4816_v50 = vld [vmem:[%s5657_s1 + $0x220] sm:$0xff]  }
  0xd3   : > { %4420 = vmatpush3.bf16.msra.mxu0 %v4809_v17  ;;  %4391 = vmatprep.mubr.bf16.mxu0 %v5017_v62  ;;  %v4817_v62 = vld [vmem:[%s5657_s1 + $0x228] sm:$0xff]  }
  0xd4   : > { %4421 = vmatprep.subr.bf16.mxu0 %v4811_v38 }
  0xd7   : > { %4422 = vmatpush3.bf16.msra.mxu0 %v4811_v38 }
  0xd8   : > { %4423 = vmatprep.subr.bf16.mxu0 %v4813_v34 }
  0xd9   : > { %4168 = vmatmul.mubr.bf16.gmra.mrb[20].mxu1 %v5273_v31 }
  0xda   : > { %4392 = vmatmul.mubr.bf16.gmra.mrb[4].mxu0 %v5030_v10  ;;  %4171 = vmatprep.mubr.bf16.mxu1 %v5289_v27  ;;  %v4818_v10 = vld [vmem:[%s5657_s1 + $0x230] sm:$0xff]  }
  0xdb   : > { %4395 = vmatprep.mubr.bf16.mxu0 %v5056_v42  ;;  %4424 = vmatpush3.bf16.msra.mxu0 %v4813_v34  ;;  %v4819_v42 = vld [vmem:[%s5657_s1 + $0x238] sm:$0xff]  }
  0xdc   : > { %4425 = vmatprep.subr.bf16.mxu0 %v4815_v60 }
  0xdf   : > { %4426 = vmatpush3.bf16.msra.mxu0 %v4815_v60 }
  0xe0   : > { %4427 = vmatprep.subr.bf16.mxu0 %v4816_v50 }
  0xe1   : > { %4172 = vmatmul.mubr.bf16.gmra.mrb[24].mxu1 %v5292_v57 }
  0xe2   : > { %4396 = vmatmul.mubr.bf16.gmra.mrb[8].mxu0 %v5059_v43  ;;  %4175 = vmatprep.mubr.bf16.mxu1 %v5309_v16  ;;  %v4822_v43 = vld [vmem:[%s5657_s1 + $0x108] sm:$0xff]  }
  0xe3   : > { %4399 = vmatprep.mubr.bf16.mxu0 %v5099_v36  ;;  %4428 = vmatpush3.bf16.msra.mxu0 %v4816_v50  ;;  %v4823_v36 = vld [vmem:[%s5657_s1 + $0x110] sm:$0xff]  }
  0xe4   : > { %4429 = vmatprep.subr.bf16.mxu0 %v4817_v62 }
  0xe7   : > { %4430 = vmatpush3.bf16.msra.mxu0 %v4817_v62 }
  0xe8   : > { %4431 = vmatprep.subr.bf16.mxu0 %v4818_v10 }
  0xe9   : > { %4176 = vmatmul.mubr.bf16.gmra.mrb[28].mxu1 %v5316_v12 }
  0xea   : > { %4400 = vmatmul.mubr.bf16.gmra.mrb[12].mxu0 %v5142_v29  ;;  %4195 = vmatprep.mubr.bf16.mxu1 %v4945_v45  ;;  %v1716_v45 = vshll.u32 %v5311_v49, 16 }
  0xeb   : > { %4403 = vmatprep.mubr.bf16.mxu0 %v5151_v39  ;;  %4432 = vmatpush3.bf16.msra.mxu0 %v4818_v10 }
  0xec   : > { %4433 = vmatprep.subr.bf16.mxu0 %v4819_v42  ;;  %v1718_v52 = vrot.slane %v1716_v45, 1 }
  0xef   : > { %4434 = vmatpush3.bf16.msra.mxu0 %v4819_v42 }
  0xf1   : > { %4196 = vmatmul.mubr.bf16.vlgmr.msra.gmra.mrb[0].mxu1 %v4952_v51  ;;  %v1714_v51 = vshrl.u32 %v5311_v49, 16 }
  0xf2   : > { %4404 = vmatmul.mubr.bf16.gmra.mrb[16].mxu0 %v5181_v22  ;;  %4475 = vmatpush3.bf16.msra.mxu1 %v4821_v21 }
  0xf3   : > { %4199 = vmatprep.mubr.bf16.mxu1 %v4966_v3  ;;  %4407 = vmatprep.mubr.bf16.mxu0 %v5188_v32  ;;  %v1721_v3 = vshll.u32 %v5313_v25, 16  ;;  %v1719_v5 = vor.u32 %v1718_v52, %v1714_v51  ;;  %v4824_v25 = vld [vmem:[%s5657_s1 + $0x118] sm:$0xff]  }
  0xf4   : > { %4468 = vmatprep.subr.bf16.mxu1 %v4822_v43 }
  0xf5   : > { %v1723_v17 = vrot.slane %v1721_v3, 1 }
  0xf6   : > { %4476 = vmatpush3.bf16.msra.mxu1 %v4822_v43 }
  0xf7   : > { %4469 = vmatprep.subr.bf16.mxu1 %v4823_v36 }
  0xf9   : > { %4200 = vmatmul.mubr.bf16.gmra.mrb[4].mxu1 %v4970_v11  ;;  %v2507_v11 = vshrl.u32 %v5416_v59, 16 }
  0xfa   : > { %4408 = vmatmul.mubr.bf16.gmra.mrb[20].mxu0 %v5215_v46  ;;  %4203 = vmatprep.mubr.bf16.mxu1 %v4988_v30  ;;  %v1724_v30 = vsel %vm456_vm0, %v1719_v5, %v1723_v17 }
  0xfb   : > { %4411 = vmatprep.mubr.bf16.mxu0 %v5222_v1  ;;  %4477 = vmatpush3.bf16.msra.mxu1 %v4823_v36  ;;  %v2512_v28 = vor.u32 %v2511_v15, %v2507_v11 }
  0xfc   : > { %4470 = vmatprep.subr.bf16.mxu1 %v4824_v25 }
  0xfd   : > { %v2517_v8 = vsel %vm456_vm0, %v2512_v28, %v2516_v33 }
  0xff   : > { %4478 = vmatpush3.bf16.msra.mxu1 %v4824_v25 }
 0x100   : > { %4471 = vmatprep.subr.bf16.mxu1 %v4825_v18 }
 0x101   : > { %4204 = vmatmul.mubr.bf16.gmra.mrb[8].mxu1 %v5006_v48  ;;  %v4827_v48 = vld [vmem:[%s5657_s1 + $0x130] sm:$0xff]  }
 0x102   : > { %4412 = vmatmul.mubr.bf16.gmra.mrb[24].mxu0 %v5242_v58  ;;  %4207 = vmatprep.mubr.bf16.mxu1 %v5019_v0  ;;  %v4828_v0 = vld [vmem:[%s5657_s1 + $0x138] sm:$0xff]  }
 0x103   : > { %4415 = vmatprep.mubr.bf16.mxu0 %v1724_v30  ;;  %4479 = vmatpush3.bf16.msra.mxu1 %v4825_v18 }
 0x104   : > { %4472 = vmatprep.subr.bf16.mxu1 %v4826_v47 }
 0x107   : > { %4480 = vmatpush3.bf16.msra.mxu1 %v4826_v47 }
 0x108   : > { %4473 = vmatprep.subr.bf16.mxu1 %v4827_v48 }
 0x109   : > { %4208 = vmatmul.mubr.bf16.gmra.mrb[12].mxu1 %v5051_v40  ;;  %v2779_v40 = vrot.slane %v5416_v59, 1 }
 0x10a   : > { %4416 = vmatmul.mubr.bf16.gmra.mrb[28].mxu0 %v2517_v8  ;;  %4211 = vmatprep.mubr.bf16.mxu1 %v5081_v14  ;;  %v2780_v14 = vrot.slane %v5482_v7, 1 }
 0x10b   : > { %4435 = vmatprep.mubr.bf16.mxu0 %v5132_v23  ;;  %4481 = vmatpush3.bf16.msra.mxu1 %v4827_v48 }
 0x10c   : > { %4474 = vmatprep.subr.bf16.mxu1 %v4828_v0 }
 0x10f   : > { %4482 = vmatpush3.bf16.msra.mxu1 %v4828_v0 }
 0x111   : > { %4212 = vmatmul.mubr.bf16.gmra.mrb[16].mxu1 %v5086_v24  ;;  %v2781_v24 = vsel %vm1132_vm1, %v2779_v40, %v2780_v14 }
 0x112   : > { %4436 = vmatmul.mubr.bf16.vlgmr.msra.gmra.mrb[0].mxu0 %v5157_v55  ;;  %4215 = vmatprep.mubr.bf16.mxu1 %v5109_v53 }
 0x113   : > { %4439 = vmatprep.mubr.bf16.mxu0 %v5184_v20 }
 0x119   : > { %4216 = vmatmul.mubr.bf16.gmra.mrb[20].mxu1 %v5114_v63 }
 0x11a   : > { %4440 = vmatmul.mubr.bf16.gmra.mrb[4].mxu0 %v5194_v56  ;;  %4219 = vmatprep.mubr.bf16.mxu1 %v5148_v35 }
 0x11b   : > { %4443 = vmatprep.mubr.bf16.mxu0 %v5219_v9 }
 0x121   : > { %4220 = vmatmul.mubr.bf16.gmra.mrb[24].mxu1 %v5154_v54 }
 0x122   : > { %4444 = vmatmul.mubr.bf16.gmra.mrb[8].mxu0 %v5225_v37  ;;  %4223 = vmatprep.mubr.bf16.mxu1 %v5178_v4 }
 0x123   : > { %4447 = vmatprep.mubr.bf16.mxu0 %v5245_v2 }
 0x129   : > { %4224 = vmatmul.mubr.bf16.gmra.mrb[28].mxu1 %v5311_v49 }
 0x12a   : > { %4448 = vmatmul.mubr.bf16.gmra.mrb[12].mxu0 %v5248_v6  ;;  %4259 = vmatprep.mubr.bf16.mxu1 %v5142_v29 }
 0x12b   : > { %4451 = vmatprep.mubr.bf16.mxu0 %v5267_v19  ;;  %v5559_v19 = vld [vmem:[%s5659_s3] ss:$0 sm:$0xff] }
 0x131   : > { %4260 = vmatmul.mubr.bf16.vlgmr.msra.gmra.mrb[16].mxu1 %v5151_v39 }
 0x132   : > { %4452 = vmatmul.mubr.bf16.gmra.mrb[16].mxu0 %v5273_v31  ;;  %4263 = vmatprep.mubr.bf16.mxu1 %v5181_v22 }
 0x133   : > { %4455 = vmatprep.mubr.bf16.mxu0 %v5289_v27 }
 0x139   : > { %4264 = vmatmul.mubr.bf16.gmra.mrb[20].mxu1 %v5188_v32 }
 0x13a   : > { %4456 = vmatmul.mubr.bf16.gmra.mrb[20].mxu0 %v5292_v57  ;;  %4267 = vmatprep.mubr.bf16.mxu1 %v5215_v46 }
 0x13b   : > { %4459 = vmatprep.mubr.bf16.mxu0 %v5309_v16 }
 0x141   : > { %4268 = vmatmul.mubr.bf16.gmra.mrb[24].mxu1 %v5222_v1 }
 0x142   : > { %4460 = vmatmul.mubr.bf16.gmra.mrb[24].mxu0 %v5316_v12  ;;  %4271 = vmatprep.mubr.bf16.mxu1 %v5242_v58  ;;  %v5554_v58 = vld [vmem:[%s5658_s2] ss:$0 sm:$0xff] }
 0x143   : > { %4463 = vmatprep.mubr.bf16.mxu0 %v5331_v44 }
 0x149   : > { %4272 = vmatmul.mubr.bf16.gmra.mrb[28].mxu1 %v1724_v30 }
 0x14a   : > { %4464 = vmatmul.mubr.bf16.gmra.mrb[28].mxu0 %v2781_v24 }
 0x1c4   : > { %v4197_v53 = vpop.f32.mrb[0].mxu1 }
 0x1c5   : > { %v1554_v63 = vpop.f32.mrb[1].mxu1 }
 0x1c6   : > { %v4198_v23 = vpop.f32.mrb[2].mxu1 }
 0x1c7   : > { %v1557_v29 = vpop.f32.mrb[3].mxu1 }
 0x1cc   : > { %v4201_v35 = vpop.f32.mrb[4].mxu1 }
 0x1cd   : > { %v1570_v39 = vpop.f32.mrb[5].mxu1 }
 0x1ce   : > { %v4202_v54 = vpop.f32.mrb[6].mxu1 }
 0x1cf   : > { %v1573_v55 = vpop.f32.mrb[7].mxu1 }
 0x1d4   : > { %v4205_v4 = vpop.f32.mrb[8].mxu1 }
 0x1d5   : > { %v1586_v22 = vpop.f32.mrb[9].mxu1 }
 0x1d6   : > { %v4206_v20 = vpop.f32.mrb[10].mxu1 }
 0x1d7   : > { %v5541_v32 = vpop.f32.mrb[11].mxu1 }
 0x1dc   : > { %v5543_v56 = vpop.f32.mrb[12].mxu1 }
 0x1dd   : > { %v5545_v46 = vpop.f32.mrb[13].mxu1 }
 0x1de   : > { %v5547_v9 = vpop.f32.mrb[14].mxu1 }
 0x1df   : > { %v5549_v1 = vpop.f32.mrb[15].mxu1 }
 0x1e5   : > { %v4437_v37 = vpop.f32.mrb[0].mxu0 }
 0x1e6   : > { %v4483_v2 = vadd.f32 %v4437_v37, %v4197_v53  ;;  %v2882_v6 = vpop.f32.mrb[1].mxu0 }
 0x1e7   : > { %v4484_v31 = vadd.f32 %v2882_v6, %v1554_v63  ;;  %v4438_v27 = vpop.f32.mrb[2].mxu0 }
 0x1e8   : > { %v3050_v57 = vmul.f32 %v4483_v2, %v5554_v58  ;;  %v4485_v16 = vadd.f32 %v4438_v27, %v4198_v23  ;;  %v2885_v49 = vpop.f32.mrb[3].mxu0 }
 0x1e9   : > { %v3048_v12 = vmul.f32 %v4484_v31, %v5554_v58  ;;  %v4486_v44 = vadd.f32 %v2885_v49, %v1557_v29 }
 0x1ea   : > { %v3089_v59 = vadd.f32 %v5559_v19, %v3050_v57  ;;  %v3051_v26 = vmul.f32 %v4485_v16, %v5554_v58 }
 0x1eb   : > { %v3087_v38 = vadd.f32 %v5559_v19, %v3048_v12  ;;  %v3049_v21 = vmul.f32 %v4486_v44, %v5554_v58 }
 0x1ec   : > { %v3090_v34 = vadd.f32 %v5559_v19, %v3051_v26  ;;  %v3121_v62 = vmax.f32 %v3089_v59, 0.0 }
 0x1ed   : > { %v3088_v60 = vadd.f32 %v5559_v19, %v3049_v21  ;;  %v4441_v50 = vpop.f32.mrb[4].mxu0  ;;  %v3119_v45 = vmax.f32 %v3087_v38, 0.0 }
 0x1ee   : > { %v3122_v10 = vmax.f32 %v3090_v34, 0.0  ;;  %v4487_v42 = vadd.f32 %v4441_v50, %v4201_v35  ;;  %v2898_v43 = vpop.f32.mrb[5].mxu0 }
 0x1ef   : > { %v3120_v36 = vmax.f32 %v3088_v60, 0.0  ;;  %v4488_v51 = vadd.f32 %v2898_v43, %v1570_v39  ;;  %v4442_v52 = vpop.f32.mrb[6].mxu0 }
 0x1f0   : > { %v3717_v3 = vpack.c.bf16 %v3122_v10, %v3121_v62  ;;  %v3054_v41 = vmul.f32 %v4487_v42, %v5554_v58  ;;  %v4489_v7 = vadd.f32 %v4442_v52, %v4202_v54  ;;  %v2901_v13 = vpop.f32.mrb[7].mxu0 }
 0x1f1   : > { %v3712_v5 = vpack.c.bf16 %v3120_v36, %v3119_v45  ;;  %v3052_v17 = vmul.f32 %v4488_v51, %v5554_v58  ;;  %v4490_v25 = vadd.f32 %v2901_v13, %v1573_v55 }
 0x1f2   : > { %3804 = vst [vmem:[%s5574_s14 + $0x8] sm:$0xff] %v3717_v3   ;;  %v3093_v11 = vadd.f32 %v5559_v19, %v3054_v41  ;;  %v3055_v15 = vmul.f32 %v4489_v7, %v5554_v58 }
 0x1f3   : > { %3713 = vst [vmem:[%s5574_s14] sm:$0xff] %v3712_v5   ;;  %v3091_v61 = vadd.f32 %v5559_v19, %v3052_v17  ;;  %v3053_v30 = vmul.f32 %v4490_v25, %v5554_v58 }
 0x1f4   : > { %v3094_v18 = vadd.f32 %v5559_v19, %v3055_v15  ;;  %v3125_v47 = vmax.f32 %v3093_v11, 0.0 }
 0x1f5   : > { %v3092_v28 = vadd.f32 %v5559_v19, %v3053_v30  ;;  %v4445_v33 = vpop.f32.mrb[8].mxu0  ;;  %v3123_v40 = vmax.f32 %v3091_v61, 0.0 }
 0x1f6   : > { %v3126_v8 = vmax.f32 %v3094_v18, 0.0  ;;  %v4491_v48 = vadd.f32 %v4445_v33, %v4205_v4  ;;  %v2914_v0 = vpop.f32.mrb[9].mxu0 }
 0x1f7   : > { %v3124_v14 = vmax.f32 %v3092_v28, 0.0  ;;  %v4492_v24 = vadd.f32 %v2914_v0, %v1586_v22  ;;  %v4446_v53 = vpop.f32.mrb[10].mxu0 }
 0x1f8   : > { %v3727_v63 = vpack.c.bf16 %v3126_v8, %v3125_v47  ;;  %v3058_v23 = vmul.f32 %v4491_v48, %v5554_v58  ;;  %v4493_v29 = vadd.f32 %v4446_v53, %v4206_v20  ;;  %v2917_v35 = vpop.f32.mrb[11].mxu0 }
 0x1f9   : > { %v3722_v39 = vpack.c.bf16 %v3124_v14, %v3123_v40  ;;  %v3056_v54 = vmul.f32 %v4492_v24, %v5554_v58  ;;  %v4494_v55 = vadd.f32 %v2917_v35, %v5541_v32 }
 0x1fa   : > { %3806 = vst [vmem:[%s5574_s14 + $0x18] sm:$0xff] %v3727_v63   ;;  %v3097_v37 = vadd.f32 %v5559_v19, %v3058_v23  ;;  %v3059_v4 = vmul.f32 %v4493_v29, %v5554_v58 }
 0x1fb   : > { %3805 = vst [vmem:[%s5574_s14 + $0x10] sm:$0xff] %v3722_v39   ;;  %v3095_v2 = vadd.f32 %v5559_v19, %v3056_v54  ;;  %v3057_v22 = vmul.f32 %v4494_v55, %v5554_v58 }
 0x1fc   : > { %v3098_v6 = vadd.f32 %v5559_v19, %v3059_v4  ;;  %v3129_v27 = vmax.f32 %v3097_v37, 0.0 }
 0x1fd   : > { %v3096_v20 = vadd.f32 %v5559_v19, %v3057_v22  ;;  %v4449_v31 = vpop.f32.mrb[12].mxu0  ;;  %v3127_v49 = vmax.f32 %v3095_v2, 0.0 }
 0x1fe   : > { %v3130_v57 = vmax.f32 %v3098_v6, 0.0  ;;  %v4495_v32 = vadd.f32 %v4449_v31, %v5543_v56  ;;  %v2930_v16 = vpop.f32.mrb[13].mxu0 }
 0x1ff   : > { %v3128_v12 = vmax.f32 %v3096_v20, 0.0  ;;  %v4496_v44 = vadd.f32 %v2930_v16, %v5545_v46  ;;  %v4450_v59 = vpop.f32.mrb[14].mxu0 }
 0x200   : > { %v3737_v26 = vpack.c.bf16 %v3130_v57, %v3129_v27  ;;  %v3062_v38 = vmul.f32 %v4495_v32, %v5554_v58  ;;  %v4497_v21 = vadd.f32 %v4450_v59, %v5547_v9  ;;  %v2933_v34 = vpop.f32.mrb[15].mxu0 }
 0x201   : > { %v3732_v60 = vpack.c.bf16 %v3128_v12, %v3127_v49  ;;  %v3060_v50 = vmul.f32 %v4496_v44, %v5554_v58  ;;  %v4498_v62 = vadd.f32 %v2933_v34, %v5549_v1 }
 0x202   : > { %3808 = vst [vmem:[%s5574_s14 + $0x28] sm:$0xff] %v3737_v26   ;;  %v3101_v56 = vadd.f32 %v5559_v19, %v3062_v38  ;;  %v3063_v10 = vmul.f32 %v4497_v21, %v5554_v58 }
 0x203   : > { %3807 = vst [vmem:[%s5574_s14 + $0x20] sm:$0xff] %v3732_v60   ;;  %v3099_v46 = vadd.f32 %v5559_v19, %v3060_v50  ;;  %v3061_v42 = vmul.f32 %v4498_v62, %v5554_v58 }
 0x204   : > { %v3102_v43 = vadd.f32 %v5559_v19, %v3063_v10  ;;  %v4261_v45 = vpop.f32.mrb[16].mxu1  ;;  %v3133_v52 = vmax.f32 %v3101_v56, 0.0 }
 0x205   : > { %v3100_v9 = vadd.f32 %v5559_v19, %v3061_v42  ;;  %v4453_v36 = vpop.f32.mrb[16].mxu0  ;;  %v1889_v51 = vpop.f32.mrb[17].mxu1  ;;  %v3131_v13 = vmax.f32 %v3099_v46, 0.0 }
 0x206   : > { %v3134_v3 = vmax.f32 %v3102_v43, 0.0  ;;  %v4499_v1 = vadd.f32 %v4453_v36, %v4261_v45  ;;  %v2946_v41 = vpop.f32.mrb[17].mxu0  ;;  %v4262_v7 = vpop.f32.mrb[18].mxu1 }
 0x207   : > { %v3132_v5 = vmax.f32 %v3100_v9, 0.0  ;;  %v4500_v17 = vadd.f32 %v2946_v41, %v1889_v51  ;;  %v4454_v25 = vpop.f32.mrb[18].mxu0  ;;  %v1892_v11 = vpop.f32.mrb[19].mxu1 }
 0x208   : > { %v3747_v15 = vpack.c.bf16 %v3134_v3, %v3133_v52  ;;  %v3066_v61 = vmul.f32 %v4499_v1, %v5554_v58  ;;  %v4501_v30 = vadd.f32 %v4454_v25, %v4262_v7  ;;  %v2949_v18 = vpop.f32.mrb[19].mxu0 }
 0x209   : > { %v3742_v28 = vpack.c.bf16 %v3132_v5, %v3131_v13  ;;  %v3064_v33 = vmul.f32 %v4500_v17, %v5554_v58  ;;  %v4502_v47 = vadd.f32 %v2949_v18, %v1892_v11 }
 0x20a   : > { %3810 = vst [vmem:[%s5574_s14 + $0x38] sm:$0xff] %v3747_v15   ;;  %v3105_v8 = vadd.f32 %v5559_v19, %v3066_v61  ;;  %v3067_v48 = vmul.f32 %v4501_v30, %v5554_v58 }
 0x20b   : > { %3809 = vst [vmem:[%s5574_s14 + $0x30] sm:$0xff] %v3742_v28   ;;  %v3103_v0 = vadd.f32 %v5559_v19, %v3064_v33  ;;  %v3065_v40 = vmul.f32 %v4502_v47, %v5554_v58 }
 0x20c   : > { %v3106_v14 = vadd.f32 %v5559_v19, %v3067_v48  ;;  %v4265_v24 = vpop.f32.mrb[20].mxu1  ;;  %v3137_v29 = vmax.f32 %v3105_v8, 0.0 }
 0x20d   : > { %v3104_v53 = vadd.f32 %v5559_v19, %v3065_v40  ;;  %v4457_v63 = vpop.f32.mrb[20].mxu0  ;;  %v1905_v23 = vpop.f32.mrb[21].mxu1  ;;  %v3135_v37 = vmax.f32 %v3103_v0, 0.0 }
 0x20e   : > { %v3138_v35 = vmax.f32 %v3106_v14, 0.0  ;;  %v4503_v39 = vadd.f32 %v4457_v63, %v4265_v24  ;;  %v2962_v54 = vpop.f32.mrb[21].mxu0  ;;  %v4266_v55 = vpop.f32.mrb[22].mxu1 }
 0x20f   : > { %v3136_v4 = vmax.f32 %v3104_v53, 0.0  ;;  %v4504_v2 = vadd.f32 %v2962_v54, %v1905_v23  ;;  %v4458_v22 = vpop.f32.mrb[22].mxu0  ;;  %v1908_v6 = vpop.f32.mrb[23].mxu1 }
 0x210   : > { %v3757_v20 = vpack.c.bf16 %v3138_v35, %v3137_v29  ;;  %v3070_v31 = vmul.f32 %v4503_v39, %v5554_v58  ;;  %v4505_v27 = vadd.f32 %v4458_v22, %v4266_v55  ;;  %v2965_v57 = vpop.f32.mrb[23].mxu0 }
 0x211   : > { %v3752_v32 = vpack.c.bf16 %v3136_v4, %v3135_v37  ;;  %v3068_v16 = vmul.f32 %v4504_v2, %v5554_v58  ;;  %v4506_v49 = vadd.f32 %v2965_v57, %v1908_v6 }
 0x212   : > { %3812 = vst [vmem:[%s5574_s14 + $0x48] sm:$0xff] %v3757_v20   ;;  %v3109_v12 = vadd.f32 %v5559_v19, %v3070_v31  ;;  %v3071_v44 = vmul.f32 %v4505_v27, %v5554_v58 }
 0x213   : > { %3811 = vst [vmem:[%s5574_s14 + $0x40] sm:$0xff] %v3752_v32   ;;  %v3107_v59 = vadd.f32 %v5559_v19, %v3068_v16  ;;  %v3069_v26 = vmul.f32 %v4506_v49, %v5554_v58 }
 0x214   : > { %v3110_v38 = vadd.f32 %v5559_v19, %v3071_v44  ;;  %v4269_v21 = vpop.f32.mrb[24].mxu1  ;;  %v3141_v62 = vmax.f32 %v3109_v12, 0.0 }
 0x215   : > { %v3108_v34 = vadd.f32 %v5559_v19, %v3069_v26  ;;  %v4461_v60 = vpop.f32.mrb[24].mxu0  ;;  %v1921_v50 = vpop.f32.mrb[25].mxu1  ;;  %v3139_v43 = vmax.f32 %v3107_v59, 0.0 }
 0x216   : > { %v3142_v56 = vmax.f32 %v3110_v38, 0.0  ;;  %v4507_v10 = vadd.f32 %v4461_v60, %v4269_v21  ;;  %v2978_v46 = vpop.f32.mrb[25].mxu0  ;;  %v4270_v42 = vpop.f32.mrb[26].mxu1 }
 0x217   : > { %v3140_v45 = vmax.f32 %v3108_v34, 0.0  ;;  %v4508_v9 = vadd.f32 %v2978_v46, %v1921_v50  ;;  %v4462_v36 = vpop.f32.mrb[26].mxu0  ;;  %v1924_v51 = vpop.f32.mrb[27].mxu1 }
 0x218   : > { %v3767_v52 = vpack.c.bf16 %v3142_v56, %v3141_v62  ;;  %v3074_v3 = vmul.f32 %v4507_v10, %v5554_v58  ;;  %v4509_v1 = vadd.f32 %v4462_v36, %v4270_v42  ;;  %v2981_v41 = vpop.f32.mrb[27].mxu0 }
 0x219   : > { %v3762_v7 = vpack.c.bf16 %v3140_v45, %v3139_v43  ;;  %v3072_v13 = vmul.f32 %v4508_v9, %v5554_v58  ;;  %v4510_v5 = vadd.f32 %v2981_v41, %v1924_v51 }
 0x21a   : > { %3814 = vst [vmem:[%s5574_s14 + $0x58] sm:$0xff] %v3767_v52   ;;  %v3113_v17 = vadd.f32 %v5559_v19, %v3074_v3  ;;  %v3075_v25 = vmul.f32 %v4509_v1, %v5554_v58 }
 0x21b   : > { %3813 = vst [vmem:[%s5574_s14 + $0x50] sm:$0xff] %v3762_v7   ;;  %v3111_v11 = vadd.f32 %v5559_v19, %v3072_v13  ;;  %v3073_v15 = vmul.f32 %v4510_v5, %v5554_v58 }
 0x21c   : > { %v3114_v61 = vadd.f32 %v5559_v19, %v3075_v25  ;;  %v4273_v30 = vpop.f32.mrb[28].mxu1  ;;  %v3145_v47 = vmax.f32 %v3113_v17, 0.0 }
 0x21d   : > { %v3112_v18 = vadd.f32 %v5559_v19, %v3073_v15  ;;  %v4465_v28 = vpop.f32.mrb[28].mxu0  ;;  %v1937_v33 = vpop.f32.mrb[29].mxu1  ;;  %v3143_v14 = vmax.f32 %v3111_v11, 0.0 }
 0x21e   : > { %v3146_v8 = vmax.f32 %v3114_v61, 0.0  ;;  %v4511_v48 = vadd.f32 %v4465_v28, %v4273_v30  ;;  %v2994_v0 = vpop.f32.mrb[29].mxu0  ;;  %v4274_v40 = vpop.f32.mrb[30].mxu1 }
 0x21f   : > { %v3144_v24 = vmax.f32 %v3112_v18, 0.0  ;;  %v4512_v53 = vadd.f32 %v2994_v0, %v1937_v33  ;;  %v4466_v63 = vpop.f32.mrb[30].mxu0  ;;  %v1940_v23 = vpop.f32.mrb[31].mxu1 }
 0x220   : > { %v3777_v29 = vpack.c.bf16 %v3146_v8, %v3145_v47  ;;  %v3078_v35 = vmul.f32 %v4511_v48, %v5554_v58  ;;  %v4513_v39 = vadd.f32 %v4466_v63, %v4274_v40  ;;  %v2997_v54 = vpop.f32.mrb[31].mxu0 }
 0x221   : > { %v3772_v55 = vpack.c.bf16 %v3144_v24, %v3143_v14  ;;  %v3076_v37 = vmul.f32 %v4512_v53, %v5554_v58  ;;  %v4514_v4 = vadd.f32 %v2997_v54, %v1940_v23 }
 0x222   : > { %3816 = vst [vmem:[%s5574_s14 + $0x68] sm:$0xff] %v3777_v29   ;;  %v3117_v2 = vadd.f32 %v5559_v19, %v3078_v35  ;;  %v3079_v22 = vmul.f32 %v4513_v39, %v5554_v58 }
 0x223   : > { %3815 = vst [vmem:[%s5574_s14 + $0x60] sm:$0xff] %v3772_v55   ;;  %v3115_v6 = vadd.f32 %v5559_v19, %v3076_v37  ;;  %v3077_v20 = vmul.f32 %v4514_v4, %v5554_v58 }
 0x224   : > { %v3118_v31 = vadd.f32 %v5559_v19, %v3079_v22  ;;  %v3149_v57 = vmax.f32 %v3117_v2, 0.0 }
 0x225   : > { %v3116_v27 = vadd.f32 %v5559_v19, %v3077_v20  ;;  %v3147_v16 = vmax.f32 %v3115_v6, 0.0 }
 0x226   : > { %v3150_v32 = vmax.f32 %v3118_v31, 0.0 }
 0x227   : > { %v3148_v49 = vmax.f32 %v3116_v27, 0.0 }
 0x228   : > { %v3787_v12 = vpack.c.bf16 %v3150_v32, %v3149_v57 }
 0x229   : > { %v3782_v44 = vpack.c.bf16 %v3148_v49, %v3147_v16 }
 0x22a   : > { %3818 = vst [vmem:[%s5574_s14 + $0x78] sm:$0xff] %v3787_v12  }
 0x22b   : > { %3817 = vst [vmem:[%s5574_s14 + $0x70] sm:$0xff] %v3782_v44  }
 0x22c PF: > { %s14_s15 = sadd.s32 1, %s4835_s15  }
 0x22d   : > { %p11_p4 = scmp.ge.s32.totalorder %s14_s15, 4  }
 0x22f   :  { %13 = sbr.rel (!%p11_p4) target bundleno = 1 (0x1), region = 75 }

</bundles_post_ra>
